<compile_context>
chip_gen: v7x
topology: tpu7x:2x2x1
jax: 0.10.0
libtpu: 0.0.40
codegen_flags: <defaults>
</compile_context>

<pallas_src>
from functools import partial

import numpy as np
import jax
import jax.numpy as jnp
from jax.experimental import pallas as pl
from jax.experimental.pallas import tpu as pltpu


# --------------------------------------------------------------------------
# Host-side pooling-matrix builders (static shapes -> baked-in constants)
# --------------------------------------------------------------------------
def _adaptive_pool_1d(in_size, out_size):
    """1-D averaging matrix reproducing torch AdaptiveAvgPool bin boundaries."""
    m = np.zeros((out_size, in_size), dtype=np.float32)
    for i in range(out_size):
        s = (i * in_size) // out_size
        e = -((-(i + 1) * in_size) // out_size)  # ceil((i+1)*in/out)
        m[i, s:e] = 1.0 / (e - s)
    return m


def _avgpool2_1d(in_size):
    """1-D matrix for 2x2/stride-2 average pooling (floor semantics)."""
    out = in_size // 2
    m = np.zeros((out, in_size), dtype=np.float32)
    for i in range(out):
        m[i, 2 * i] = 0.5
        m[i, 2 * i + 1] = 0.5
    return m


def _flat_right_matrix(mh, mw):
    """X_flat (C, H*W) @ kron(mh, mw).T  ==  mh @ X @ mw.T  (flattened)."""
    return jnp.asarray(np.kron(mh, mw).T)


# --------------------------------------------------------------------------
# Fused backbone + FeatureExtractor kernel (one batch item per grid step)
# --------------------------------------------------------------------------
def _fused_backbone_kernel(
    x_ref, w0_ref, b0_ref, w3_ref, b3_ref, w6_ref, b6_ref,
    p1_ref, p2_ref, p3_ref, a4_ref, a6_ref,
    c_ref, f4_ref, f6_ref, f8_ref, *, c4):
    f32 = jnp.float32
    x = x_ref[0]                                                     # (Cin, H*W)

    # layers 0,1: 1x1 conv + ReLU (spatial on lanes, channels on sublanes)
    h = jnp.dot(w0_ref[...], x, preferred_element_type=f32) + b0_ref[...]
    h = jnp.maximum(h, 0.0)                                          # (16, HW)
    # layer 2: 2x2 avg pool as one lane-dense contraction
    h = jnp.dot(h, p1_ref[...], preferred_element_type=f32)         # (16, HW/4)
    # layers 3,4: 1x1 conv + ReLU  -> hooked feature '4'
    f4 = jnp.maximum(
        jnp.dot(w3_ref[...], h, preferred_element_type=f32) + b3_ref[...], 0.0)
    f4_ref[0] = f4.astype(f4_ref.dtype)                              # (24, HW/4)
    # layer 5: 2x2 avg pool
    h = jnp.dot(f4, p2_ref[...], preferred_element_type=f32)        # (24, HW/16)
    # layer 6: 1x1 conv (no ReLU)  -> hooked feature '6'
    f6 = jnp.dot(w6_ref[...], h, preferred_element_type=f32) + b6_ref[...]
    f6_ref[0] = f6.astype(f6_ref.dtype)                              # (32, HW/16)
    # layers 7,8: ReLU + 2x2 avg pool  -> hooked feature '8'
    f8 = jnp.dot(jnp.maximum(f6, 0.0), p3_ref[...], preferred_element_type=f32)
    f8_ref[0] = f8.astype(f8_ref.dtype)

    # FeatureExtractor concat: AdaptiveAvgPool2d((7,7)) of '4' and '6' written
    # straight into the fused output at their channel offsets ('8' is dropped).
    c_ref[0, :c4, :] = jnp.dot(f4, a4_ref[...],
                               preferred_element_type=f32).astype(c_ref.dtype)
    c_ref[0, c4:, :] = jnp.dot(f6, a6_ref[...],
                               preferred_element_type=f32).astype(c_ref.dtype)


# --------------------------------------------------------------------------
# Parameters + forward
# --------------------------------------------------------------------------
def init_params(key, c_in=4):
    ks = jax.random.split(key, 6)

    def wb(kw, kb, cin, cout):
        w = jax.random.normal(kw, (cout, cin), jnp.float32) * 0.1
        b = jax.random.normal(kb, (cout,), jnp.float32) * 0.01
        return w, b

    return {
        "0": wb(ks[0], ks[1], c_in, 16),   # layer 0: Conv1x1(4 ->16)
        "3": wb(ks[2], ks[3], 16, 24),     # layer 3: Conv1x1(16->24)
        "6": wb(ks[4], ks[5], 24, 32),     # layer 6: Conv1x1(24->32)
    }


@jax.jit
def feature_extractor_forward(params, x):
    """Mirrors FeatureExtractor.forward with hooks on layers '4', '6', '8'.

    Synthetic backbone (nn.Sequential-style indices):
      0 Conv1x1  1 ReLU  2 AvgPool2  3 Conv1x1  4 ReLU[hook]
      5 AvgPool2  6 Conv1x1[hook]  7 ReLU  8 AvgPool2[hook]
    """
    N, Cin, H, W = x.shape
    (w0, b0), (w3, b3), (w6, b6) = params["0"], params["3"], params["6"]
    C0, C3, C6 = w0.shape[0], w3.shape[0], w6.shape[0]

    Hf4, Wf4 = H // 2, W // 2          # feat '4' spatial (after layer 2 pool)
    Hf6, Wf6 = Hf4 // 2, Wf4 // 2      # feat '6' spatial (after layer 5 pool)
    Hf8, Wf8 = Hf6 // 2, Wf6 // 2      # feat '8' spatial (after layer 8 pool)

    # Pool / adaptive-pool matrices acting on the flattened (lane) spatial dim.
    p1 = _flat_right_matrix(_avgpool2_1d(H), _avgpool2_1d(W))
    p2 = _flat_right_matrix(_avgpool2_1d(Hf4), _avgpool2_1d(Wf4))
    p3 = _flat_right_matrix(_avgpool2_1d(Hf6), _avgpool2_1d(Wf6))
    a4 = _flat_right_matrix(_adaptive_pool_1d(Hf4, 7), _adaptive_pool_1d(Wf4, 7))
    a6 = _flat_right_matrix(_adaptive_pool_1d(Hf6, 7), _adaptive_pool_1d(Wf6, 7))

    x2 = x.reshape(N, Cin, H * W)      # contiguous reshape, no transpose
    Cc = C3 + C6

    const2d = lambda shape: pl.BlockSpec(shape, lambda n: (0, 0))
    per_n = lambda c, s: pl.BlockSpec((1, c, s), lambda n: (n, 0, 0))

    out_shapes = (
        jax.ShapeDtypeStruct((N, Cc, 7 * 7), jnp.float32),        # concat c
        jax.ShapeDtypeStruct((N, C3, Hf4 * Wf4), jnp.float32),    # feat '4'
        jax.ShapeDtypeStruct((N, C6, Hf6 * Wf6), jnp.float32),    # feat '6'
        jax.ShapeDtypeStruct((N, C6, Hf8 * Wf8), jnp.float32),    # feat '8'
    )

    c, f4, f6, f8 = pl.pallas_call(
        partial(_fused_backbone_kernel, c4=C3),
        out_shape=out_shapes,
        grid_spec=pltpu.PrefetchScalarGridSpec(
            num_scalar_prefetch=0,
            grid=(N,),
            in_specs=[
                per_n(Cin, H * W),
                const2d((C0, Cin)), const2d((C0, 1)),
                const2d((C3, C0)), const2d((C3, 1)),
                const2d((C6, C3)), const2d((C6, 1)),
                const2d(p1.shape), const2d(p2.shape), const2d(p3.shape),
                const2d(a4.shape), const2d(a6.shape),
            ],
            out_specs=[
                per_n(Cc, 7 * 7),
                per_n(C3, Hf4 * Wf4),
                per_n(C6, Hf6 * Wf6),
                per_n(C6, Hf8 * Wf8),
            ],
        ),
        compiler_params=pltpu.CompilerParams(
            dimension_semantics=("parallel",),
            vmem_limit_bytes=32 * 1024 * 1024,
        ),
    )(x2, w0, b0.reshape(C0, 1), w3, b3.reshape(C3, 1), w6, b6.reshape(C6, 1),
      p1, p2, p3, a4, a6)

    features = {
        "4": f4.reshape(N, C3, Hf4, Wf4),
        "6": f6.reshape(N, C6, Hf6, Wf6),
        "8": f8.reshape(N, C6, Hf8, Wf8),
    }
    return c.reshape(N, Cc, 7, 7), features


# --------------------------------------------------------------------------
# Pure-JAX reference (correctness check only)
# --------------------------------------------------------------------------
def _reference_forward(params, x):
    (w0, b0), (w3, b3), (w6, b6) = params["0"], params["3"], params["6"]
    hp = jax.lax.Precision.HIGHEST

    def conv1x1(h, w, b, relu):
        y = jnp.einsum("oc,nchw->nohw", w, h, precision=hp) + b[None, :, None, None]
        return jnp.maximum(y, 0.0) if relu else y

    def pool2(h):
        n, c, hh, ww = h.shape
        h = h[:, :, : (hh // 2) * 2, : (ww // 2) * 2]
        return h.reshape(n, c, hh // 2, 2, ww // 2, 2).mean(axis=(3, 5))

    def adaptive7(h):
        n, c, hh, ww = h.shape
        ah = jnp.asarray(_adaptive_pool_1d(hh, 7))
        aw = jnp.asarray(_adaptive_pool_1d(ww, 7))
        return jnp.einsum("ph,nchw,qw->ncpq", ah, h, aw, precision=hp)

    h = conv1x1(x, w0, b0, True)
    h = pool2(h)
    f4 = conv1x1(h, w3, b3, True)
    h = pool2(f4)
    f6 = conv1x1(h, w6, b6, False)
    f8 = pool2(jnp.maximum(f6, 0.0))
    c = jnp.concatenate([adaptive7(f4), adaptive7(f6)], axis=1)
    return c, {"4": f4, "6": f6, "8": f8}


if __name__ == "__main__":
    key = jax.random.PRNGKey(0)
    kx, kp = jax.random.split(key)
    x = jax.random.normal(kx, (2, 4, 28, 28), jnp.float32)   # NCHW
    params = init_params(kp, c_in=4)

    c, features = feature_extractor_forward(params, x)
    jax.block_until_ready(c)
    for v in features.values():
        jax.block_until_ready(v)

    assert c.shape == (2, 24 + 32, 7, 7), c.shape
    assert features["4"].shape == (2, 24, 14, 14)
    assert features["6"].shape == (2, 32, 7, 7)
    assert features["8"].shape == (2, 32, 3, 3)

    c_ref, feats_ref = _reference_forward(params, x)
    np.testing.assert_allclose(np.asarray(c), np.asarray(c_ref),
                               rtol=1e-3, atol=1e-3)
    for k in ("4", "6", "8"):
        np.testing.assert_allclose(np.asarray(features[k]),
                                   np.asarray(feats_ref[k]),
                                   rtol=1e-3, atol=1e-3)
    print("KERNEL_OK")
</pallas_src>

<mosaic_0001>
module attributes {stable_mosaic.version = 11 : i64} {
  func.func @_fused_backbone_kernel(%arg0: i32, %arg1: memref<1x4x784xf32, #tpu.memory_space<vmem>>, %arg2: memref<16x4xf32, #tpu.memory_space<vmem>>, %arg3: memref<16x1xf32, #tpu.memory_space<vmem>>, %arg4: memref<24x16xf32, #tpu.memory_space<vmem>>, %arg5: memref<24x1xf32, #tpu.memory_space<vmem>>, %arg6: memref<32x24xf32, #tpu.memory_space<vmem>>, %arg7: memref<32x1xf32, #tpu.memory_space<vmem>>, %arg8: memref<784x196xf32, #tpu.memory_space<vmem>>, %arg9: memref<196x49xf32, #tpu.memory_space<vmem>>, %arg10: memref<49x9xf32, #tpu.memory_space<vmem>>, %arg11: memref<196x49xf32, #tpu.memory_space<vmem>>, %arg12: memref<49x49xf32, #tpu.memory_space<vmem>>, %arg13: memref<1x56x49xf32, #tpu.memory_space<vmem>>, %arg14: memref<1x24x196xf32, #tpu.memory_space<vmem>>, %arg15: memref<1x32x49xf32, #tpu.memory_space<vmem>>, %arg16: memref<1x32x9xf32, #tpu.memory_space<vmem>>) attributes {dimension_semantics = [#tpu.dimension_semantics<parallel>], iteration_bounds = array<i64: 2>, scalar_prefetch = 0 : i64, scratch_operands = 0 : i64, tpu.core_type = #tpu.core_type<tc>, window_params = [{transform_indices = @transform_0, window_bounds = array<i64: 1, 4, 784>}, {pipeline_mode = #tpu.pipeline_mode<synchronous>, transform_indices = @transform_1, window_bounds = array<i64: 16, 4>}, {pipeline_mode = #tpu.pipeline_mode<synchronous>, transform_indices = @transform_2, window_bounds = array<i64: 16, 1>}, {pipeline_mode = #tpu.pipeline_mode<synchronous>, transform_indices = @transform_3, window_bounds = array<i64: 24, 16>}, {pipeline_mode = #tpu.pipeline_mode<synchronous>, transform_indices = @transform_4, window_bounds = array<i64: 24, 1>}, {pipeline_mode = #tpu.pipeline_mode<synchronous>, transform_indices = @transform_5, window_bounds = array<i64: 32, 24>}, {pipeline_mode = #tpu.pipeline_mode<synchronous>, transform_indices = @transform_6, window_bounds = array<i64: 32, 1>}, {pipeline_mode = #tpu.pipeline_mode<synchronous>, transform_indices = @transform_7, window_bounds = array<i64: 784, 196>}, {pipeline_mode = #tpu.pipeline_mode<synchronous>, transform_indices = @transform_8, window_bounds = array<i64: 196, 49>}, {pipeline_mode = #tpu.pipeline_mode<synchronous>, transform_indices = @transform_9, window_bounds = array<i64: 49, 9>}, {pipeline_mode = #tpu.pipeline_mode<synchronous>, transform_indices = @transform_10, window_bounds = array<i64: 196, 49>}, {pipeline_mode = #tpu.pipeline_mode<synchronous>, transform_indices = @transform_11, window_bounds = array<i64: 49, 49>}, {transform_indices = @transform_12, window_bounds = array<i64: 1, 56, 49>}, {transform_indices = @transform_13, window_bounds = array<i64: 1, 24, 196>}, {transform_indices = @transform_14, window_bounds = array<i64: 1, 32, 49>}, {transform_indices = @transform_15, window_bounds = array<i64: 1, 32, 9>}]} {
    %c0 = arith.constant 0 : index
    %c0_0 = arith.constant 0 : index
    %c0_1 = arith.constant 0 : index
    %0 = vector.load %arg1[%c0, %c0_0, %c0_1] : memref<1x4x784xf32, #tpu.memory_space<vmem>>, vector<1x4x784xf32>
    %1 = vector.shape_cast %0 : vector<1x4x784xf32> to vector<4x784xf32>
    %c0_2 = arith.constant 0 : index
    %c0_3 = arith.constant 0 : index
    %2 = vector.load %arg2[%c0_2, %c0_3] : memref<16x4xf32, #tpu.memory_space<vmem>>, vector<16x4xf32>
    %cst = arith.constant dense<0.000000e+00> : vector<16x784xf32>
    %3 = tpu.matmul %2, %1, %cst {dimension_numbers = #tpu.dot_dimension_numbers<[1], [0], [0], [1], [0, 0, 1, 1], [], []>} : vector<16x4xf32>, vector<4x784xf32>, vector<16x784xf32> -> vector<16x784xf32>
    %c0_4 = arith.constant 0 : index
    %c0_5 = arith.constant 0 : index
    %4 = vector.load %arg3[%c0_4, %c0_5] : memref<16x1xf32, #tpu.memory_space<vmem>>, vector<16x1xf32>
    %5 = vector.broadcast %4 : vector<16x1xf32> to vector<16x784xf32>
    %6 = arith.addf %3, %5 : vector<16x784xf32>
    %cst_6 = arith.constant 0.000000e+00 : f32
    %7 = vector.broadcast %cst_6 : f32 to vector<16x784xf32>
    %8 = arith.maximumf %6, %7 : vector<16x784xf32>
    %c0_7 = arith.constant 0 : index
    %c0_8 = arith.constant 0 : index
    %9 = vector.load %arg8[%c0_7, %c0_8] : memref<784x196xf32, #tpu.memory_space<vmem>>, vector<784x196xf32>
    %cst_9 = arith.constant dense<0.000000e+00> : vector<16x196xf32>
    %10 = tpu.matmul %8, %9, %cst_9 {dimension_numbers = #tpu.dot_dimension_numbers<[1], [0], [0], [1], [0, 0, 1, 1], [], []>} : vector<16x784xf32>, vector<784x196xf32>, vector<16x196xf32> -> vector<16x196xf32>
    %c0_10 = arith.constant 0 : index
    %c0_11 = arith.constant 0 : index
    %11 = vector.load %arg4[%c0_10, %c0_11] : memref<24x16xf32, #tpu.memory_space<vmem>>, vector<24x16xf32>
    %cst_12 = arith.constant dense<0.000000e+00> : vector<24x196xf32>
    %12 = tpu.matmul %11, %10, %cst_12 {dimension_numbers = #tpu.dot_dimension_numbers<[1], [0], [0], [1], [0, 0, 1, 1], [], []>} : vector<24x16xf32>, vector<16x196xf32>, vector<24x196xf32> -> vector<24x196xf32>
    %c0_13 = arith.constant 0 : index
    %c0_14 = arith.constant 0 : index
    %13 = vector.load %arg5[%c0_13, %c0_14] : memref<24x1xf32, #tpu.memory_space<vmem>>, vector<24x1xf32>
    %14 = vector.broadcast %13 : vector<24x1xf32> to vector<24x196xf32>
    %15 = arith.addf %12, %14 : vector<24x196xf32>
    %cst_15 = arith.constant 0.000000e+00 : f32
    %16 = vector.broadcast %cst_15 : f32 to vector<24x196xf32>
    %17 = arith.maximumf %15, %16 : vector<24x196xf32>
    %c0_16 = arith.constant 0 : index
    %c0_17 = arith.constant 0 : index
    %c0_18 = arith.constant 0 : index
    %18 = vector.load %arg14[%c0_16, %c0_17, %c0_18] : memref<1x24x196xf32, #tpu.memory_space<vmem>>, vector<1x24x196xf32>
    %19 = vector.shape_cast %18 : vector<1x24x196xf32> to vector<24x196xf32>
    %20 = vector.shape_cast %17 : vector<24x196xf32> to vector<1x24x196xf32>
    tpu.vector_store %arg14[%c0_16, %c0_17, %c0_18], %20 {strides = array<i32>} : memref<1x24x196xf32, #tpu.memory_space<vmem>>, vector<1x24x196xf32>,
    %c0_19 = arith.constant 0 : index
    %c0_20 = arith.constant 0 : index
    %21 = vector.load %arg9[%c0_19, %c0_20] : memref<196x49xf32, #tpu.memory_space<vmem>>, vector<196x49xf32>
    %cst_21 = arith.constant dense<0.000000e+00> : vector<24x49xf32>
    %22 = tpu.matmul %17, %21, %cst_21 {dimension_numbers = #tpu.dot_dimension_numbers<[1], [0], [0], [1], [0, 0, 1, 1], [], []>} : vector<24x196xf32>, vector<196x49xf32>, vector<24x49xf32> -> vector<24x49xf32>
    %c0_22 = arith.constant 0 : index
    %c0_23 = arith.constant 0 : index
    %23 = vector.load %arg6[%c0_22, %c0_23] : memref<32x24xf32, #tpu.memory_space<vmem>>, vector<32x24xf32>
    %cst_24 = arith.constant dense<0.000000e+00> : vector<32x49xf32>
    %24 = tpu.matmul %23, %22, %cst_24 {dimension_numbers = #tpu.dot_dimension_numbers<[1], [0], [0], [1], [0, 0, 1, 1], [], []>} : vector<32x24xf32>, vector<24x49xf32>, vector<32x49xf32> -> vector<32x49xf32>
    %c0_25 = arith.constant 0 : index
    %c0_26 = arith.constant 0 : index
    %25 = vector.load %arg7[%c0_25, %c0_26] : memref<32x1xf32, #tpu.memory_space<vmem>>, vector<32x1xf32>
    %26 = vector.broadcast %25 : vector<32x1xf32> to vector<32x49xf32>
    %27 = arith.addf %24, %26 : vector<32x49xf32>
    %c0_27 = arith.constant 0 : index
    %c0_28 = arith.constant 0 : index
    %c0_29 = arith.constant 0 : index
    %28 = vector.load %arg15[%c0_27, %c0_28, %c0_29] : memref<1x32x49xf32, #tpu.memory_space<vmem>>, vector<1x32x49xf32>
    %29 = vector.shape_cast %28 : vector<1x32x49xf32> to vector<32x49xf32>
    %30 = vector.shape_cast %27 : vector<32x49xf32> to vector<1x32x49xf32>
    tpu.vector_store %arg15[%c0_27, %c0_28, %c0_29], %30 {strides = array<i32>} : memref<1x32x49xf32, #tpu.memory_space<vmem>>, vector<1x32x49xf32>,
    %cst_30 = arith.constant 0.000000e+00 : f32
    %31 = vector.broadcast %cst_30 : f32 to vector<32x49xf32>
    %32 = arith.maximumf %27, %31 : vector<32x49xf32>
    %c0_31 = arith.constant 0 : index
    %c0_32 = arith.constant 0 : index
    %33 = vector.load %arg10[%c0_31, %c0_32] : memref<49x9xf32, #tpu.memory_space<vmem>>, vector<49x9xf32>
    %cst_33 = arith.constant dense<0.000000e+00> : vector<32x9xf32>
    %34 = tpu.matmul %32, %33, %cst_33 {dimension_numbers = #tpu.dot_dimension_numbers<[1], [0], [0], [1], [0, 0, 1, 1], [], []>} : vector<32x49xf32>, vector<49x9xf32>, vector<32x9xf32> -> vector<32x9xf32>
    %c0_34 = arith.constant 0 : index
    %c0_35 = arith.constant 0 : index
    %c0_36 = arith.constant 0 : index
    %35 = vector.load %arg16[%c0_34, %c0_35, %c0_36] : memref<1x32x9xf32, #tpu.memory_space<vmem>>, vector<1x32x9xf32>
    %36 = vector.shape_cast %35 : vector<1x32x9xf32> to vector<32x9xf32>
    %37 = vector.shape_cast %34 : vector<32x9xf32> to vector<1x32x9xf32>
    tpu.vector_store %arg16[%c0_34, %c0_35, %c0_36], %37 {strides = array<i32>} : memref<1x32x9xf32, #tpu.memory_space<vmem>>, vector<1x32x9xf32>,
    %c0_37 = arith.constant 0 : index
    %c0_38 = arith.constant 0 : index
    %38 = vector.load %arg11[%c0_37, %c0_38] : memref<196x49xf32, #tpu.memory_space<vmem>>, vector<196x49xf32>
    %cst_39 = arith.constant dense<0.000000e+00> : vector<24x49xf32>
    %39 = tpu.matmul %17, %38, %cst_39 {dimension_numbers = #tpu.dot_dimension_numbers<[1], [0], [0], [1], [0, 0, 1, 1], [], []>} : vector<24x196xf32>, vector<196x49xf32>, vector<24x49xf32> -> vector<24x49xf32>
    %c0_40 = arith.constant 0 : index
    %c0_41 = arith.constant 0 : index
    %c0_42 = arith.constant 0 : index
    %40 = vector.load %arg13[%c0_40, %c0_41, %c0_42] : memref<1x56x49xf32, #tpu.memory_space<vmem>>, vector<1x24x49xf32>
    %41 = vector.shape_cast %40 : vector<1x24x49xf32> to vector<24x49xf32>
    %42 = vector.shape_cast %39 : vector<24x49xf32> to vector<1x24x49xf32>
    tpu.vector_store %arg13[%c0_40, %c0_41, %c0_42], %42 {strides = array<i32>} : memref<1x56x49xf32, #tpu.memory_space<vmem>>, vector<1x24x49xf32>,
    %c0_43 = arith.constant 0 : index
    %c0_44 = arith.constant 0 : index
    %43 = vector.load %arg12[%c0_43, %c0_44] : memref<49x49xf32, #tpu.memory_space<vmem>>, vector<49x49xf32>
    %cst_45 = arith.constant dense<0.000000e+00> : vector<32x49xf32>
    %44 = tpu.matmul %27, %43, %cst_45 {dimension_numbers = #tpu.dot_dimension_numbers<[1], [0], [0], [1], [0, 0, 1, 1], [], []>} : vector<32x49xf32>, vector<49x49xf32>, vector<32x49xf32> -> vector<32x49xf32>
    %c0_46 = arith.constant 0 : index
    %c24 = arith.constant 24 : index
    %c0_47 = arith.constant 0 : index
    %45 = vector.load %arg13[%c0_46, %c24, %c0_47] : memref<1x56x49xf32, #tpu.memory_space<vmem>>, vector<1x32x49xf32>
    %46 = vector.shape_cast %45 : vector<1x32x49xf32> to vector<32x49xf32>
    %47 = vector.shape_cast %44 : vector<32x49xf32> to vector<1x32x49xf32>
    tpu.vector_store %arg13[%c0_46, %c24, %c0_47], %47 {strides = array<i32>} : memref<1x56x49xf32, #tpu.memory_space<vmem>>, vector<1x32x49xf32>,
    return
  }
  func.func @transform_0(%arg0: i32) -> (i32, i32, i32) {
    %c0_i32 = arith.constant 0 : i32
    %c0_i32_0 = arith.constant 0 : i32
    %c0_i32_1 = arith.constant 0 : i32
    return %arg0, %c0_i32, %c0_i32_0 : i32, i32, i32
  }
  func.func @transform_1(%arg0: i32) -> (i32, i32) {
    %c0_i32 = arith.constant 0 : i32
    %c0_i32_0 = arith.constant 0 : i32
    %c0_i32_1 = arith.constant 0 : i32
    return %c0_i32, %c0_i32_0 : i32, i32
  }
  func.func @transform_2(%arg0: i32) -> (i32, i32) {
    %c0_i32 = arith.constant 0 : i32
    %c0_i32_0 = arith.constant 0 : i32
    %c0_i32_1 = arith.constant 0 : i32
    return %c0_i32, %c0_i32_0 : i32, i32
  }
  func.func @transform_3(%arg0: i32) -> (i32, i32) {
    %c0_i32 = arith.constant 0 : i32
    %c0_i32_0 = arith.constant 0 : i32
    %c0_i32_1 = arith.constant 0 : i32
    return %c0_i32, %c0_i32_0 : i32, i32
  }
  func.func @transform_4(%arg0: i32) -> (i32, i32) {
    %c0_i32 = arith.constant 0 : i32
    %c0_i32_0 = arith.constant 0 : i32
    %c0_i32_1 = arith.constant 0 : i32
    return %c0_i32, %c0_i32_0 : i32, i32
  }
  func.func @transform_5(%arg0: i32) -> (i32, i32) {
    %c0_i32 = arith.constant 0 : i32
    %c0_i32_0 = arith.constant 0 : i32
    %c0_i32_1 = arith.constant 0 : i32
    return %c0_i32, %c0_i32_0 : i32, i32
  }
  func.func @transform_6(%arg0: i32) -> (i32, i32) {
    %c0_i32 = arith.constant 0 : i32
    %c0_i32_0 = arith.constant 0 : i32
    %c0_i32_1 = arith.constant 0 : i32
    return %c0_i32, %c0_i32_0 : i32, i32
  }
  func.func @transform_7(%arg0: i32) -> (i32, i32) {
    %c0_i32 = arith.constant 0 : i32
    %c0_i32_0 = arith.constant 0 : i32
    %c0_i32_1 = arith.constant 0 : i32
    return %c0_i32, %c0_i32_0 : i32, i32
  }
  func.func @transform_8(%arg0: i32) -> (i32, i32) {
    %c0_i32 = arith.constant 0 : i32
    %c0_i32_0 = arith.constant 0 : i32
    %c0_i32_1 = arith.constant 0 : i32
    return %c0_i32, %c0_i32_0 : i32, i32
  }
  func.func @transform_9(%arg0: i32) -> (i32, i32) {
    %c0_i32 = arith.constant 0 : i32
    %c0_i32_0 = arith.constant 0 : i32
    %c0_i32_1 = arith.constant 0 : i32
    return %c0_i32, %c0_i32_0 : i32, i32
  }
  func.func @transform_10(%arg0: i32) -> (i32, i32) {
    %c0_i32 = arith.constant 0 : i32
    %c0_i32_0 = arith.constant 0 : i32
    %c0_i32_1 = arith.constant 0 : i32
    return %c0_i32, %c0_i32_0 : i32, i32
  }
  func.func @transform_11(%arg0: i32) -> (i32, i32) {
    %c0_i32 = arith.constant 0 : i32
    %c0_i32_0 = arith.constant 0 : i32
    %c0_i32_1 = arith.constant 0 : i32
    return %c0_i32, %c0_i32_0 : i32, i32
  }
  func.func @transform_12(%arg0: i32) -> (i32, i32, i32) {
    %c0_i32 = arith.constant 0 : i32
    %c0_i32_0 = arith.constant 0 : i32
    %c0_i32_1 = arith.constant 0 : i32
    return %arg0, %c0_i32, %c0_i32_0 : i32, i32, i32
  }
  func.func @transform_13(%arg0: i32) -> (i32, i32, i32) {
    %c0_i32 = arith.constant 0 : i32
    %c0_i32_0 = arith.constant 0 : i32
    %c0_i32_1 = arith.constant 0 : i32
    return %arg0, %c0_i32, %c0_i32_0 : i32, i32, i32
  }
  func.func @transform_14(%arg0: i32) -> (i32, i32, i32) {
    %c0_i32 = arith.constant 0 : i32
    %c0_i32_0 = arith.constant 0 : i32
    %c0_i32_1 = arith.constant 0 : i32
    return %arg0, %c0_i32, %c0_i32_0 : i32, i32, i32
  }
  func.func @transform_15(%arg0: i32) -> (i32, i32, i32) {
    %c0_i32 = arith.constant 0 : i32
    %c0_i32_0 = arith.constant 0 : i32
    %c0_i32_1 = arith.constant 0 : i32
    return %arg0, %c0_i32, %c0_i32_0 : i32, i32, i32
  }
}

</mosaic_0001>

<bundles_post_ra>
// kernel: feature_extractor_forward.1
= control target key start
LH: loop header
LB: loop body
LE: loop exit
PB: predicated region body
PF: predicated region fallthrough
CT: control target
= control target key end

     0   :  { %21 = vsyncpa [#allocation3], 0  ;;  %s2923_s18 = smov 0   ;;  %s3447_s0 = inlined_call_operand.vmem [shape: f32[2,4,784], index: 0, kind: input, shape index: {}]   ;;  %s3448_s1 = inlined_call_operand.vmem [shape: f32[16,4], index: 1, kind: input, shape index: {}]   ;;  %s3449_s2 = inlined_call_operand.vmem [shape: f32[16,1], index: 2, kind: input, shape index: {}]   ;;  %s3450_s3 = inlined_call_operand.vmem [shape: f32[24,16], index: 3, kind: input, shape index: {}]   ;;  %s3451_s4 = inlined_call_operand.vmem [shape: f32[24,1], index: 4, kind: input, shape index: {}]   ;;  %s3452_s5 = inlined_call_operand.vmem [shape: f32[32,24], index: 5, kind: input, shape index: {}]   ;;  %s3453_s6 = inlined_call_operand.vmem [shape: f32[32,1], index: 6, kind: input, shape index: {}]   ;;  %s3454_s7 = inlined_call_operand.hbm [shape: f32[784,196], index: 7, kind: input, shape index: {}]   ;;  %s3455_s8 = inlined_call_operand.vmem [shape: f32[196,49], index: 8, kind: input, shape index: {}, may-alias: {8,10}]   ;;  %s3456_s9 = inlined_call_operand.vmem [shape: f32[49,9], index: 9, kind: input, shape index: {}]   ;;  %s3457_s10 = inlined_call_operand.vmem [shape: f32[196,49], index: 10, kind: input, shape index: {}, may-alias: {8,10}]   ;;  %s3458_s11 = inlined_call_operand.vmem [shape: f32[49,49], index: 11, kind: input, shape index: {}]   ;;  %s3459_s12 = inlined_call_operand.vmem [shape: f32[2,56,49], index: 12, kind: output, shape index: {0}]   ;;  %s3460_s13 = inlined_call_operand.vmem [shape: f32[2,24,196], index: 13, kind: output, shape index: {1}]   ;;  %s3461_s14 = inlined_call_operand.vmem [shape: f32[2,32,49], index: 14, kind: output, shape index: {2}]   ;;  %s3462_s15 = inlined_call_operand.vmem [shape: f32[2,32,9], index: 15, kind: output, shape index: {3}]  }
   0x1 LB: > { %s2929_s19 = sadd.s32 4294967295, %s2835_s18   ;;  %p2306_p0 = scmp.ge.s32.totalorder %s2835_s18, 1  ;;  %s2835_s18 = sphi %s2923_s18, %s27_s18  }
   0x2   : > { %p393_p1 = scmp.lt.s32.totalorder %s2835_s18, 3  ;;  %s2837_s20 = smov [#allocation2]  }
   0x3   : > { %s423_s21 = sshll.u32 %s2837_s20, 4  ;;  %p3463_p3 = scmp.eq.s32.totalorder %s2929_s19, 0  ;;  %s424_s21 = int_to_ptr.vmem [resolvable:$true] %s423_s21 }
   0x4   : > { %p2933_p2 = pnand %p2306_p0, %p393_p1  ;;  %s2797_s26 = scalar_lea.hbm %s3454_s7, 25088 }
   0x5   : > { %p2798_p6 = scmp.ne.s32.totalorder %s3454_s7, %s2797_s26  ;;  %p2804_p10 = scmp.lt.u32.totalorder %s2797_s26, %s3454_s7 }
   0x6   : > { %s3465_s22 = scalar_select %p2933_p2, 1, 0 }
   0x7   : > { %p2772_p4 = pneg %p2933_p2 }
   0x9   : > { %p2942_p5 = pnand %p3463_p3, %p2772_p4 }
   0xb   : > { %p2799_p7 = pneg %p2942_p5 }
   0xd   : > { %p2800_p8 = pnand %p2799_p7, %p2798_p6 }
   0xf   : > { %p2801_p9 = pneg %p2800_p8 }
  0x11   : > { %p2806_p11 = pnand %p2804_p10, %p2801_p9 }
  0x13   : > { %2809 = shalt.err (!%p2806_p11)
}
  0x14   : > { %s2810_s16 = scalar_lea.vmem %s424_s21, 25088  ;;  %p2818_p1 = scmp.lt.s32.totalorder %s424_s21, %s424_s21 }
  0x15   : > { %p2811_p12 = scmp.ne.s32.totalorder %s424_s21, %s2810_s16  ;;  %p2819_p4 = scmp.lt.s32.totalorder %s2810_s16, %s2810_s16 }
  0x17   : > { %p2813_p13 = pnand %p2811_p12, %p2799_p7  ;;  %p2820_p3 = por %p2819_p4, %p2818_p1 }
  0x19   : > { %p2814_p0 = pneg %p2813_p13 }
  0x1b   : > { %p2821_p2 = pnand %p2820_p3, %p2814_p0 }
  0x1d   : > { %2824 = shalt.err (!%p2821_p2)
}
  0x1e   : > { %s2838_s17 = smov 256   ;;  %s2839_s20 = smov 16  }
  0x1f   : > { %2775 = dma.hbm_to_vmem [thread:$0]  (!%p2942_p5), %s3454_s7, 25088, %s424_s21, [#allocation3], %s2838_s17, %s2838_s17, %s2839_s20  }
  0x20   : > { %p3467_p6 = scmp.ne.s32.totalorder %s3465_s22, 0 }
  0x21   : > { %p3468_p8 = scmp.eq.s32.totalorder (!%p3467_p6), %s2929_s19, 0 }
  0x22   : > { %459 = sbr.rel (%p3467_p6) target bundleno = 1566 (0x61e), region = 68 }
  0x29   : > { %2830 = dma.done.wait (%p3468_p8), [#allocation3], 25088   ;;  %p3469_p7 = pmov %p3468_p8 }
  0x2a   : > { %p522_p2 = scmp.lt.s32.totalorder %s2929_s19, 1  ;;  %v2840_v0 = vmov 0.0   ;;  %v2841_v1 = vmov 0   ;;  %vm579_vm0 = vcmask 1043456   ;;  %v2985_v6 = vld [vmem:[%s3448_s1] sm:$0xff]  ;;  %vm572_vm1 = vcmask 31744  }
  0x2b   : > { %2832 = vsyncadd (%p3469_p7), [#allocation3], 4294942208  ;;  %658 = vmatprep.mubr.f32.mxu1 %v2840_v0  ;;  %2792 = vset.pattern.permute.xlu0 %v2841_v1  ;;  %v553_v8 = vld [vmem:[%s3449_s2] sm:$0xff]  ;;  %v554_v10 = vld [vmem:[%s3449_s2 + $0x8] sm:$0xff]  ;;  %vm1110_vm2 = vcmask 130048   ;;  %vm1545_vm3 = vcmask 556032  }
  0x2c   : > { %s3471_s19 = smov (!%p522_p2, %s2929_s19), 1  ;;  %2793 = vset.pattern.permute.xlu1 %v2841_v1  ;;  %557 = vperm.xlu0 %2792, %v553_v8   ;;  %v915_v11 = vld [vmem:[#allocation2 + $0x8] sm:$0xff]  ;;  %v917_v12 = vld [vmem:[#allocation2 + $0x18] sm:$0xff]  ;;  %v914_v13 = vld [vmem:[#allocation2] sm:$0xff]  ;;  %vm1696_vm4 = vcmask 195584   ;;  %vm1822_vm5 = vcmask 1040384  }
  0x2d   : > { %s2765_s21 = smul.u32 28, %s3471_s19  ;;  %v916_v14 = vld [vmem:[#allocation2 + $0x10] sm:$0xff]  ;;  %v2453_v15 = vpack.c.bf16 %v917_v12, %v915_v11  ;;  %v919_v17 = vld [vmem:[#allocation2 + $0x28] sm:$0xff]  ;;  %v921_v18 = vld [vmem:[#allocation2 + $0x38] sm:$0xff]  ;;  %vm1794_vm6 = vcmask 400384   ;;  %vm1911_vm7 = vcmask 72704  }
  0x2e   : > { %v2455_v16 = vpack.c.bf16 %v916_v14, %v914_v13  ;;  %v3002_v19 = vld [vmem:[%s3448_s1 + $0x8] sm:$0xff]  ;;  %v2457_v20 = vpack.c.bf16 %v921_v18, %v919_v17  ;;  %v918_v21 = vld [vmem:[#allocation2 + $0x20] sm:$0xff]  ;;  %v920_v22 = vld [vmem:[#allocation2 + $0x30] sm:$0xff]  ;;  %s2767_s27 = smul.u32 48, %s3471_s19 }
  0x2f   : > { %s2977_s26 = scalar_lea.vmem %s3447_s0, %s2765_s21  ;;  %v1430_v23 = vld [vmem:[%s3451_s4 + $0x10] sm:$0xff]  ;;  %2454 = vmatprep.subr.bf16.mxu0 %v2453_v15  ;;  %v2459_v24 = vpack.c.bf16 %v920_v22, %v918_v21  ;;  %v923_v25 = vld [vmem:[#allocation2 + $0x48] sm:$0xff]  ;;  %v925_v26 = vld [vmem:[#allocation2 + $0x58] sm:$0xff]  ;;  %s2766_s23 = smul.u32 56, %s3471_s19 }
  0x30   : > { %v547_v2 = vld [vmem:[%s2977_s26] sm:$0xff]  ;;  %v548_v4 = vld [vmem:[%s2977_s26 + $0x8] sm:$0xff]  ;;  %v549_v5 = vld [vmem:[%s2977_s26 + $0x10] sm:$0xff]  ;;  %562 = vperm.xlu0 %2792, %v554_v10   ;;  %2456 = vmatpush1.bf16.msra.mxu0 %v2455_v16  ;;  %v2461_v33 = vpack.c.bf16 %v925_v26, %v923_v25  ;;  %s536_s30 = scalar_lea.vmem %s3460_s13, %s2767_s27  ;;  %s2362_s27 = sshll.u32 %s3471_s19, 5 }
  0x31   : > { %v569_v3 = vcombine.high %v547_v2, %v547_v2  ;;  %v570_v7 = vcombine.high %v548_v4, %v548_v4  ;;  %v571_v9 = vcombine.high %v549_v5, %v549_v5  ;;  %2458 = vmatprep.subr.bf16.mxu0 %v2457_v20  ;;  %v922_v27 = vld [vmem:[#allocation2 + $0x40] sm:$0xff]  ;;  %v924_v28 = vld [vmem:[#allocation2 + $0x50] sm:$0xff]  ;;  %v927_v29 = vld [vmem:[#allocation2 + $0x68] sm:$0xff]  ;;  %s546_s22 = scalar_lea.vmem %s3462_s15, %s2362_s27  ;;  %s531_s29 = scalar_lea.vmem %s3459_s12, %s2766_s23 }
  0x32   : > { %v929_v30 = vld [vmem:[#allocation2 + $0x78] sm:$0xff]  ;;  %v1673_v32 = vld [vmem:[%s3453_s6 + $0x8] sm:$0xff]  ;;  %v2463_v34 = vpack.c.bf16 %v924_v28, %v922_v27  ;;  %v926_v36 = vld [vmem:[#allocation2 + $0x60] sm:$0xff] }
  0x33   : > { %2318 = vmatprep.subr.msk.mxu1 %vm579_vm0, %v569_v3  ;;  %v550_v31 = vld [vmem:[%s2977_s26 + $0x18] sm:$0xf]  ;;  %v2465_v35 = vpack.c.bf16 %v929_v30, %v927_v29  ;;  %v928_v37 = vld [vmem:[#allocation2 + $0x70] sm:$0xff]  ;;  %v931_v39 = vld [vmem:[#allocation2 + $0x88] sm:$0xff] }
  0x34   : > { %2319 = vmatpush1.msk.msra.mxu1 %vm579_vm0, %v547_v2  ;;  %1443 = vperm.xlu0 %2792, %v1430_v23   ;;  %v1675_v38 = vld [vmem:[%s3453_s6 + $0x18] sm:$0xff]  ;;  %v2467_v41 = vpack.c.bf16 %v928_v37, %v926_v36  ;;  %v930_v42 = vld [vmem:[#allocation2 + $0x80] sm:$0xff]  ;;  %v932_v43 = vld [vmem:[#allocation2 + $0x90] sm:$0xff] }
  0x35   : > { %2320 = vmatmul.mubr.msk.f32.vlgmr.msra.gmra.mrb[0].mxu1 %vm572_vm1, %v2985_v6  ;;  %2322 = vmatprep.subr.msk.mxu1 %vm579_vm0, %v570_v7  ;;  %v933_v40 = vld [vmem:[#allocation2 + $0x98] sm:$0xff]  ;;  %v935_v45 = vld [vmem:[#allocation2 + $0xa8] sm:$0xff]  ;;  %v2471_v47 = vpack.c.bf16 %v932_v43, %v930_v42  ;;  %v934_v49 = vld [vmem:[#allocation2 + $0xa0] sm:$0xff] }
  0x36   : > { %664 = vmatprep.mubr.f32.mxu1 %v2840_v0  ;;  %2323 = vmatpush1.msk.msra.mxu1 %vm579_vm0, %v548_v4  ;;  %v2469_v44 = vpack.c.bf16 %v933_v40, %v931_v39  ;;  %v937_v46 = vld [vmem:[#allocation2 + $0xb8] sm:$0xff]  ;;  %v936_v50 = vld [vmem:[#allocation2 + $0xb0] sm:$0xff]  ;;  %v939_v51 = vld [vmem:[#allocation2 + $0xc8] sm:$0xff] }
  0x37   : > { %2326 = vmatprep.subr.msk.mxu1 %vm579_vm0, %v571_v9  ;;  %2460 = vmatpush1.bf16.msra.mxu0 %v2459_v24  ;;  %v2473_v48 = vpack.c.bf16 %v937_v46, %v935_v45  ;;  %v941_v52 = vld [vmem:[#allocation2 + $0xd8] sm:$0xff]  ;;  %v2475_v53 = vpack.c.bf16 %v936_v50, %v934_v49  ;;  %v938_v55 = vld [vmem:[#allocation2 + $0xc0] sm:$0xff]  ;;  %v940_v56 = vld [vmem:[#allocation2 + $0xd0] sm:$0xff] }
  0x38   : > { %1683 = vperm.xlu0 %2792, %v1673_v32   ;;  %2462 = vmatprep.subr.bf16.mxu0 %v2461_v33  ;;  %v2477_v54 = vpack.c.bf16 %v941_v52, %v939_v51  ;;  %v943_v57 = vld [vmem:[#allocation2 + $0xe8] sm:$0xff]  ;;  %v945_v58 = vld [vmem:[#allocation2 + $0xf8] sm:$0xff]  ;;  %v2479_v59 = vpack.c.bf16 %v940_v56, %v938_v55  ;;  %v942_v61 = vld [vmem:[#allocation2 + $0xe0] sm:$0xff] }
  0x39   : > { %2321 = vmatmul.mubr.msk.f32.gmra.mrb[2].mxu1 %vm572_vm1, %v3002_v19  ;;  %v2481_v60 = vpack.c.bf16 %v945_v58, %v943_v57  ;;  %v944_v62 = vld [vmem:[#allocation2 + $0xf0] sm:$0xff]  ;;  %v947_v63 = vld [vmem:[#allocation2 + $0x108] sm:$0xff]  ;;  %v949_v1 = vld [vmem:[#allocation2 + $0x118] sm:$0xff] }
  0x3a   : > { %735 = vmatprep.mubr.f32.mxu1 %v2840_v0  ;;  %v2483_v2 = vpack.c.bf16 %v944_v62, %v942_v61  ;;  %v2485_v3 = vpack.c.bf16 %v949_v1, %v947_v63  ;;  %v946_v4 = vld [vmem:[#allocation2 + $0x100] sm:$0xff]  ;;  %v953_v7 = vld [vmem:[#allocation2 + $0x138] sm:$0xff]  ;;  %v952_v11 = vld [vmem:[#allocation2 + $0x130] sm:$0xff] }
  0x3b   : > { %2464 = vmatpush1.bf16.msra.mxu0 %v2463_v34  ;;  %v950_v10 = vld [vmem:[#allocation2 + $0x120] sm:$0xff]  ;;  %v955_v12 = vld [vmem:[#allocation2 + $0x148] sm:$0xff]  ;;  %v957_v13 = vld [vmem:[#allocation2 + $0x158] sm:$0xff] }
  0x3c   : > { %2466 = vmatprep.subr.bf16.mxu0 %v2465_v35  ;;  %1693 = vperm.xlu0 %2792, %v1675_v38   ;;  %v2491_v14 = vpack.c.bf16 %v952_v11, %v950_v10  ;;  %v2493_v15 = vpack.c.bf16 %v957_v13, %v955_v12  ;;  %v954_v16 = vld [vmem:[#allocation2 + $0x140] sm:$0xff]  ;;  %v956_v17 = vld [vmem:[#allocation2 + $0x150] sm:$0xff]  ;;  %v959_v18 = vld [vmem:[#allocation2 + $0x168] sm:$0xff] }
  0x3d   : > { %2324 = vmatmul.mubr.msk.f32.vlgmr.msra.gmra.mrb[4].mxu1 %vm572_vm1, %v2985_v6  ;;  %v2495_v20 = vpack.c.bf16 %v956_v17, %v954_v16  ;;  %v958_v22 = vld [vmem:[#allocation2 + $0x160] sm:$0xff]  ;;  %v960_v23 = vld [vmem:[#allocation2 + $0x170] sm:$0xff]  ;;  %v963_v24 = vld [vmem:[#allocation2 + $0x188] sm:$0xff] }
  0x3e   : > { %741 = vmatprep.mubr.f32.mxu1 %v2840_v0  ;;  %2327 = vmatpush1.msk.msra.mxu1 %vm579_vm0, %v549_v5  ;;  %v948_v5 = vld [vmem:[#allocation2 + $0x110] sm:$0xff]  ;;  %v965_v25 = vld [vmem:[#allocation2 + $0x198] sm:$0xff]  ;;  %v2499_v26 = vpack.c.bf16 %v960_v23, %v958_v22  ;;  %v962_v28 = vld [vmem:[#allocation2 + $0x180] sm:$0xff] }
  0x3f   : > { %2396 = vmatprep.subr.msk.mxu1 %vm579_vm0, %v550_v31  ;;  %2468 = vmatpush1.bf16.msra.mxu0 %v2467_v41  ;;  %v2487_v8 = vpack.c.bf16 %v948_v5, %v946_v4  ;;  %v2501_v27 = vpack.c.bf16 %v965_v25, %v963_v24  ;;  %v964_v29 = vld [vmem:[#allocation2 + $0x190] sm:$0xff]  ;;  %v967_v30 = vld [vmem:[#allocation2 + $0x1a8] sm:$0xff]  ;;  %v966_v34 = vld [vmem:[#allocation2 + $0x1a0] sm:$0xff] }
  0x40   : > { %2470 = vmatprep.subr.bf16.mxu0 %v2469_v44  ;;  %v2503_v32 = vpack.c.bf16 %v964_v29, %v962_v28  ;;  %v968_v35 = vld [vmem:[#allocation2 + $0x1b0] sm:$0xff]  ;;  %v971_v36 = vld [vmem:[#allocation2 + $0x1c8] sm:$0xff]  ;;  %v973_v37 = vld [vmem:[#allocation2 + $0x1d8] sm:$0xff] }
  0x41   : > { %2325 = vmatmul.mubr.msk.f32.gmra.mrb[6].mxu1 %vm572_vm1, %v3002_v19  ;;  %v2507_v38 = vpack.c.bf16 %v968_v35, %v966_v34  ;;  %v2509_v39 = vpack.c.bf16 %v973_v37, %v971_v36  ;;  %v970_v40 = vld [vmem:[#allocation2 + $0x1c0] sm:$0xff]  ;;  %v972_v41 = vld [vmem:[#allocation2 + $0x1d0] sm:$0xff]  ;;  %v975_v43 = vld [vmem:[#allocation2 + $0x1e8] sm:$0xff] }
  0x42   : > { %812 = vmatprep.mubr.f32.mxu1 %v2840_v0  ;;  %v2511_v42 = vpack.c.bf16 %v972_v41, %v970_v40  ;;  %v977_v44 = vld [vmem:[#allocation2 + $0x1f8] sm:$0xff]  ;;  %v974_v46 = vld [vmem:[#allocation2 + $0x1e0] sm:$0xff]  ;;  %v979_v49 = vld [vmem:[#allocation2 + $0x208] sm:$0xff] }
  0x43   : > { %2472 = vmatpush1.bf16.msra.mxu0 %v2471_v47  ;;  %v2513_v45 = vpack.c.bf16 %v977_v44, %v975_v43  ;;  %v976_v47 = vld [vmem:[#allocation2 + $0x1f0] sm:$0xff]  ;;  %v981_v50 = vld [vmem:[#allocation2 + $0x218] sm:$0xff]  ;;  %v1107_v52 = vld [vmem:[#allocation2 + $0x608] sm:$0xff] }
  0x44   : > { %2474 = vmatprep.subr.bf16.mxu0 %v2473_v48  ;;  %v2515_v48 = vpack.c.bf16 %v976_v47, %v974_v46  ;;  %v2517_v51 = vpack.c.bf16 %v981_v50, %v979_v49  ;;  %v1106_v55 = vld [vmem:[#allocation2 + $0x600] sm:$0xff]  ;;  %v1108_v56 = vld [vmem:[#allocation2 + $0x610] sm:$0xff]  ;;  %v989_v16 = vld [vmem:[#allocation2 + $0x258] sm:$0xff] }
  0x45   : > { %2328 = vmatmul.mubr.msk.f32.vlgmr.msra.gmra.mrb[8].mxu1 %vm572_vm1, %v2985_v6  ;;  %v2647_v57 = vpack.c.bf16 %v1108_v56, %v1106_v55  ;;  %v978_v62 = vld [vmem:[#allocation2 + $0x200] sm:$0xff]  ;;  %v980_v63 = vld [vmem:[#allocation2 + $0x210] sm:$0xff]  ;;  %v995_v35 = vld [vmem:[#allocation2 + $0x288] sm:$0xff] }
  0x46   : > { %818 = vmatprep.mubr.f32.mxu1 %v2840_v0  ;;  %2397 = vmatpush3.msk.msra.mxu1 %vm579_vm0, %v550_v31  ;;  %v969_v31 = vld [vmem:[#allocation2 + $0x1b8] sm:$0xff]  ;;  %v982_v12 = vld [vmem:[#allocation2 + $0x220] sm:$0xff]  ;;  %v984_v13 = vld [vmem:[#allocation2 + $0x230] sm:$0xff] }
  0x47   : > { %2476 = vmatpush1.bf16.msra.mxu0 %v2475_v53  ;;  %v2505_v33 = vpack.c.bf16 %v969_v31, %v967_v30  ;;  %v1109_v53 = vld [vmem:[#allocation2 + $0x618] sm:$0xff]  ;;  %v986_v23 = vld [vmem:[#allocation2 + $0x240] sm:$0xff]  ;;  %v988_v24 = vld [vmem:[#allocation2 + $0x250] sm:$0xff] }
  0x48   : > { %2478 = vmatprep.subr.bf16.mxu0 %v2477_v54  ;;  %v2645_v54 = vpack.c.bf16 %v1109_v53, %v1107_v52  ;;  %v2527_v30 = vpack.c.bf16 %v988_v24, %v986_v23  ;;  %v992_v34 = vld [vmem:[#allocation2 + $0x270] sm:$0xff]  ;;  %v997_v36 = vld [vmem:[#allocation2 + $0x298] sm:$0xff]  ;;  %v994_v41 = vld [vmem:[#allocation2 + $0x280] sm:$0xff] }
  0x49   : > { %2329 = vmatmul.mubr.msk.f32.gmra.mrb[10].mxu1 %vm572_vm1, %v3002_v19  ;;  %v2533_v40 = vpack.c.bf16 %v997_v36, %v995_v35  ;;  %v999_v43 = vld [vmem:[#allocation2 + $0x2a8] sm:$0xff]  ;;  %v1001_v44 = vld [vmem:[#allocation2 + $0x2b8] sm:$0xff]  ;;  %v998_v49 = vld [vmem:[#allocation2 + $0x2a0] sm:$0xff] }
  0x4a   : > { %2398 = vmatprep.mubr.msk.f32.mxu1 %vm572_vm1, %v2985_v6  ;;  %v951_v6 = vld [vmem:[#allocation2 + $0x128] sm:$0xff]  ;;  %2646 = vmatprep.subr.bf16.mxu1 %v2645_v54  ;;  %v1000_v50 = vld [vmem:[#allocation2 + $0x2b0] sm:$0xff]  ;;  %v1005_v52 = vld [vmem:[#allocation2 + $0x2d8] sm:$0xff] }
  0x4b   : > { %2480 = vmatpush1.bf16.msra.mxu0 %v2479_v59  ;;  %v2489_v9 = vpack.c.bf16 %v953_v7, %v951_v6  ;;  %v2519_v7 = vpack.c.bf16 %v980_v63, %v978_v62  ;;  %v2539_v54 = vpack.c.bf16 %v1000_v50, %v998_v49  ;;  %v1009_v62 = vld [vmem:[#allocation2 + $0x2f8] sm:$0xff]  ;;  %v1027_v35 = vld [vmem:[#allocation2 + $0x388] sm:$0xff]  ;;  %v1030_v49 = vld [vmem:[#allocation2 + $0x3a0] sm:$0xff] }
  0x4c   : > { %2482 = vmatprep.subr.bf16.mxu0 %v2481_v60  ;;  %v1029_v36 = vld [vmem:[#allocation2 + $0x398] sm:$0xff]  ;;  %v1032_v50 = vld [vmem:[#allocation2 + $0x3b0] sm:$0xff] }
  0x4d   : > { %2399 = vmatmul.mubr.msk.f32.vlgmr.msra.gmra.mrb[12].mxu1 %vm572_vm1, %v3002_v19  ;;  %v961_v19 = vld [vmem:[#allocation2 + $0x178] sm:$0xff] }
  0x4e   : > { %1412 = vmatprep.mubr.f32.mxu1 %v2840_v0  ;;  %v2497_v21 = vpack.c.bf16 %v961_v19, %v959_v18  ;;  %2648 = vmatpush1.bf16.msra.mxu1 %v2647_v57  ;;  %v2523_v19 = vpack.c.bf16 %v984_v13, %v982_v12  ;;  %v1002_v57 = vld [vmem:[#allocation2 + $0x2c0] sm:$0xff]  ;;  %v1012_v13 = vld [vmem:[#allocation2 + $0x310] sm:$0xff] }
  0x4f   : > { %2484 = vmatpush1.bf16.msra.mxu0 %v2483_v2  ;;  %v983_v2 = vld [vmem:[#allocation2 + $0x228] sm:$0xff]  ;;  %v1010_v12 = vld [vmem:[#allocation2 + $0x300] sm:$0xff] }
  0x50   : > { %2486 = vmatprep.subr.bf16.mxu0 %v2485_v3  ;;  %v985_v3 = vld [vmem:[#allocation2 + $0x238] sm:$0xff] }
  0x51   : > { %v2521_v11 = vpack.c.bf16 %v985_v3, %v983_v2 }
  0x53   : > { %2488 = vmatpush1.bf16.msra.mxu0 %v2487_v8 }
  0x54   : > { %2490 = vmatprep.subr.bf16.mxu0 %v2489_v9 }
  0x57   : > { %2492 = vmatpush1.bf16.msra.mxu0 %v2491_v14 }
  0x58   : > { %2494 = vmatprep.subr.bf16.mxu0 %v2493_v15  ;;  %v987_v15 = vld [vmem:[#allocation2 + $0x248] sm:$0xff] }
  0x59   : > { %v2525_v22 = vpack.c.bf16 %v989_v16, %v987_v15  ;;  %v1017_v15 = vld [vmem:[#allocation2 + $0x338] sm:$0xff]  ;;  %v2551_v16 = vpack.c.bf16 %v1012_v13, %v1010_v12 }
  0x5b   : > { %2496 = vmatpush1.bf16.msra.mxu0 %v2495_v20 }
  0x5c   : > { %2498 = vmatprep.subr.bf16.mxu0 %v2497_v21 }
  0x5f   : > { %2500 = vmatpush1.bf16.msra.mxu0 %v2499_v26  ;;  %v991_v26 = vld [vmem:[#allocation2 + $0x268] sm:$0xff] }
  0x60   : > { %2502 = vmatprep.subr.bf16.mxu0 %v2501_v27  ;;  %v993_v27 = vld [vmem:[#allocation2 + $0x278] sm:$0xff] }
  0x63   : > { %2504 = vmatpush1.bf16.msra.mxu0 %v2503_v32  ;;  %v2529_v32 = vpack.c.bf16 %v993_v27, %v991_v26  ;;  %v1020_v26 = vld [vmem:[#allocation2 + $0x350] sm:$0xff]  ;;  %v1023_v27 = vld [vmem:[#allocation2 + $0x368] sm:$0xff] }
  0x64   : > { %2506 = vmatprep.subr.bf16.mxu0 %v2505_v33  ;;  %v990_v33 = vld [vmem:[#allocation2 + $0x260] sm:$0xff] }
  0x67   : > { %2508 = vmatpush1.bf16.msra.mxu0 %v2507_v38  ;;  %v2531_v38 = vpack.c.bf16 %v992_v34, %v990_v33  ;;  %v1022_v33 = vld [vmem:[#allocation2 + $0x360] sm:$0xff]  ;;  %v1024_v34 = vld [vmem:[#allocation2 + $0x370] sm:$0xff] }
  0x68   : > { %2510 = vmatprep.subr.bf16.mxu0 %v2509_v39 }
  0x6b   : > { %2512 = vmatpush1.bf16.msra.mxu0 %v2511_v42  ;;  %v996_v42 = vld [vmem:[#allocation2 + $0x290] sm:$0xff] }
  0x6c   : > { %2514 = vmatprep.subr.bf16.mxu0 %v2513_v45  ;;  %v2535_v46 = vpack.c.bf16 %v996_v42, %v994_v41  ;;  %v1026_v41 = vld [vmem:[#allocation2 + $0x380] sm:$0xff]  ;;  %v1028_v42 = vld [vmem:[#allocation2 + $0x390] sm:$0xff] }
  0x6f   : > { %2516 = vmatpush1.bf16.msra.mxu0 %v2515_v48  ;;  %v2537_v48 = vpack.c.bf16 %v1001_v44, %v999_v43  ;;  %v1031_v43 = vld [vmem:[#allocation2 + $0x3a8] sm:$0xff]  ;;  %v1033_v44 = vld [vmem:[#allocation2 + $0x3b8] sm:$0xff] }
  0x70   : > { %2518 = vmatprep.subr.bf16.mxu0 %v2517_v51  ;;  %v1003_v51 = vld [vmem:[#allocation2 + $0x2c8] sm:$0xff] }
  0x71   : > { %v2541_v56 = vpack.c.bf16 %v1005_v52, %v1003_v51  ;;  %v1035_v51 = vld [vmem:[#allocation2 + $0x3c8] sm:$0xff]  ;;  %v1037_v52 = vld [vmem:[#allocation2 + $0x3d8] sm:$0xff] }
  0xab   : > { %v3038_v58 = vpop.permute.xlu0 %557 }
  0xaf   : > { %v3042_v4 = vpop.permute.xlu0 %562 }
 0x108   : > { %v660_v59 = vpop.f32.mrb[0].mxu1 }
 0x109   : > { %v661_v60 = vadd.f32 %v660_v59, %v3038_v58  ;;  %v662_v61 = vpop.f32.mrb[1].mxu1  ;;  %v1004_v59 = vld [vmem:[#allocation2 + $0x2d0] sm:$0xff] }
 0x10a   : > { %v663_v1 = vadd.f32 %v662_v61, %v3038_v58  ;;  %v1007_v61 = vld [vmem:[#allocation2 + $0x2e8] sm:$0xff]  ;;  %v2543_v2 = vpack.c.bf16 %v1004_v59, %v1002_v57  ;;  %v1041_v59 = vld [vmem:[#allocation2 + $0x3f8] sm:$0xff] }
 0x10b   : > { %v900_v8 = vmax.f32 %v661_v60, 0.0  ;;  %v2545_v3 = vpack.c.bf16 %v1009_v62, %v1007_v61  ;;  %v1039_v57 = vld [vmem:[#allocation2 + $0x3e8] sm:$0xff]  ;;  %v1038_v62 = vld [vmem:[#allocation2 + $0x3e0] sm:$0xff] }
 0x10c   : > { %v666_v5 = vpop.f32.mrb[2].mxu1  ;;  %v901_v6 = vmax.f32 %v663_v1, 0.0  ;;  %v2577_v61 = vpack.c.bf16 %v1041_v59, %v1039_v57 }
 0x10d   : > { %v667_v9 = vadd.f32 %v666_v5, %v3042_v4  ;;  %v668_v10 = vpop.f32.mrb[3].mxu1  ;;  %v1006_v5 = vld [vmem:[#allocation2 + $0x2e0] sm:$0xff] }
 0x10e   : > { %v669_v14 = vadd.f32 %v668_v10, %v3042_v4  ;;  %1181 = vmatprep.mubr.f32.mxu0 %v901_v6  ;;  %v1008_v6 = vld [vmem:[#allocation2 + $0x2f0] sm:$0xff] }
 0x10f   : > { %1182 = vmatmul.mubr.f32.vlgmr.msra.gmra.mrb[0].mxu0 %v900_v8  ;;  %v907_v20 = vmax.f32 %v667_v9, 0.0  ;;  %v1013_v8 = vld [vmem:[#allocation2 + $0x318] sm:$0xff]  ;;  %v2547_v10 = vpack.c.bf16 %v1008_v6, %v1006_v5 }
 0x110   : > { %v908_v17 = vmax.f32 %v669_v14, 0.0  ;;  %2520 = vmatpush1.bf16.msra.mxu0 %v2519_v7  ;;  %v3046_v18 = vpop.f32.mrb[4].mxu1  ;;  %v1011_v7 = vld [vmem:[#allocation2 + $0x308] sm:$0xff] }
 0x111   : > { %v739_v21 = vpop.f32.mrb[5].mxu1  ;;  %2522 = vmatprep.subr.bf16.mxu0 %v2521_v11  ;;  %v2549_v11 = vpack.c.bf16 %v1013_v8, %v1011_v7  ;;  %v1015_v14 = vld [vmem:[#allocation2 + $0x328] sm:$0xff]  ;;  %v738_v5 = vadd.f32 %v3046_v18, %v3038_v58  ;;  %v1042_v7 = vld [vmem:[#allocation2 + $0x400] sm:$0xff]  ;;  %v1044_v8 = vld [vmem:[#allocation2 + $0x410] sm:$0xff] }
 0x112   : > { %v740_v25 = vadd.f32 %v739_v21, %v3038_v58  ;;  %1187 = vmatprep.mubr.f32.mxu0 %v908_v17  ;;  %v2553_v17 = vpack.c.bf16 %v1017_v15, %v1015_v14  ;;  %v1019_v21 = vld [vmem:[#allocation2 + $0x348] sm:$0xff]  ;;  %v2583_v12 = vpack.c.bf16 %v1044_v8, %v1042_v7  ;;  %v1081_v7 = vld [vmem:[#allocation2 + $0x538] sm:$0xff] }
 0x113   : > { %1188 = vmatmul.mubr.f32.gmra.mrb[2].mxu0 %v907_v20  ;;  %v1016_v20 = vld [vmem:[#allocation2 + $0x330] sm:$0xff]  ;;  %v902_v13 = vmax.f32 %v738_v5, 0.0 }
 0x114   : > { %v903_v28 = vmax.f32 %v740_v25, 0.0  ;;  %2524 = vmatpush1.bf16.msra.mxu0 %v2523_v19  ;;  %v3049_v29 = vpop.f32.mrb[6].mxu1  ;;  %v1014_v19 = vld [vmem:[#allocation2 + $0x320] sm:$0xff]  ;;  %v1076_v5 = vld [vmem:[#allocation2 + $0x510] sm:$0xff] }
 0x115   : > { %v3051_v31 = vpop.f32.mrb[7].mxu1  ;;  %2526 = vmatprep.subr.bf16.mxu0 %v2525_v22  ;;  %v1021_v22 = vld [vmem:[#allocation2 + $0x358] sm:$0xff]  ;;  %v2555_v23 = vpack.c.bf16 %v1016_v20, %v1014_v19  ;;  %v1018_v25 = vld [vmem:[#allocation2 + $0x340] sm:$0xff]  ;;  %v744_v14 = vadd.f32 %v3049_v29, %v3042_v4  ;;  %v1051_v20 = vld [vmem:[#allocation2 + $0x448] sm:$0xff] }
 0x116   : > { %1258 = vmatprep.mubr.f32.mxu0 %v903_v28  ;;  %v2557_v24 = vpack.c.bf16 %v1021_v22, %v1019_v21  ;;  %v1025_v28 = vld [vmem:[#allocation2 + $0x378] sm:$0xff] }
 0x117   : > { %v1053_v21 = vld [vmem:[#allocation2 + $0x458] sm:$0xff]  ;;  %v909_v22 = vmax.f32 %v744_v14, 0.0 }
 0x118   : > { %2528 = vmatpush1.bf16.msra.mxu0 %v2527_v30  ;;  %v3053_v37 = vpop.f32.mrb[8].mxu1  ;;  %v2559_v30 = vpack.c.bf16 %v1020_v26, %v1018_v25  ;;  %v1052_v25 = vld [vmem:[#allocation2 + $0x450] sm:$0xff]  ;;  %v1055_v26 = vld [vmem:[#allocation2 + $0x468] sm:$0xff] }
 0x119   : > { %v3055_v39 = vpop.f32.mrb[9].mxu1  ;;  %2530 = vmatprep.subr.bf16.mxu0 %v2529_v32  ;;  %v2561_v32 = vpack.c.bf16 %v1025_v28, %v1023_v27  ;;  %v1057_v27 = vld [vmem:[#allocation2 + $0x478] sm:$0xff] }
 0x11a   : > { %v817_v19 = vadd.f32 %v3055_v39, %v3038_v58  ;;  %v2593_v39 = vpack.c.bf16 %v1057_v27, %v1055_v26  ;;  %v1090_v26 = vld [vmem:[#allocation2 + $0x580] sm:$0xff]  ;;  %v1092_v27 = vld [vmem:[#allocation2 + $0x590] sm:$0xff] }
 0x11c   : > { %2532 = vmatpush1.bf16.msra.mxu0 %v2531_v38  ;;  %v3057_v45 = vpop.f32.mrb[10].mxu1  ;;  %v2563_v38 = vpack.c.bf16 %v1024_v34, %v1022_v33  ;;  %v905_v29 = vmax.f32 %v817_v19, 0.0  ;;  %v1059_v33 = vld [vmem:[#allocation2 + $0x488] sm:$0xff]  ;;  %v1061_v34 = vld [vmem:[#allocation2 + $0x498] sm:$0xff] }
 0x11d   : > { %v3059_v47 = vpop.f32.mrb[11].mxu1  ;;  %2534 = vmatprep.subr.bf16.mxu0 %v2533_v40  ;;  %v2565_v40 = vpack.c.bf16 %v1029_v36, %v1027_v35  ;;  %v2597_v36 = vpack.c.bf16 %v1061_v34, %v1059_v33  ;;  %v1089_v19 = vld [vmem:[#allocation2 + $0x578] sm:$0xff]  ;;  %v1094_v33 = vld [vmem:[#allocation2 + $0x5a0] sm:$0xff]  ;;  %v1096_v34 = vld [vmem:[#allocation2 + $0x5b0] sm:$0xff] }
 0x120   : > { %2536 = vmatpush1.bf16.msra.mxu0 %v2535_v46  ;;  %v2400_v53 = vpop.f32.mrb[12].mxu1  ;;  %v2567_v46 = vpack.c.bf16 %v1028_v42, %v1026_v41  ;;  %v1063_v41 = vld [vmem:[#allocation2 + $0x4a8] sm:$0xff]  ;;  %v1065_v42 = vld [vmem:[#allocation2 + $0x4b8] sm:$0xff] }
 0x121   : > { %v891_v55 = vpop.f32.mrb[13].mxu1  ;;  %2538 = vmatprep.subr.bf16.mxu0 %v2537_v48  ;;  %v897_v63 = vadd.f32 %v2400_v53, %v3042_v4  ;;  %v2569_v48 = vpack.c.bf16 %v1033_v44, %v1031_v43  ;;  %v2571_v53 = vpack.c.bf16 %v1032_v50, %v1030_v49  ;;  %v2601_v44 = vpack.c.bf16 %v1065_v42, %v1063_v41  ;;  %v1067_v49 = vld [vmem:[#allocation2 + $0x4c8] sm:$0xff]  ;;  %v1069_v50 = vld [vmem:[#allocation2 + $0x4d8] sm:$0xff]  ;;  %v1098_v41 = vld [vmem:[#allocation2 + $0x5c0] sm:$0xff] }
 0x122   : > { %v892_v60 = vadd.f32 %v891_v55, %v3038_v58  ;;  %v1034_v55 = vld [vmem:[#allocation2 + $0x3c0] sm:$0xff]  ;;  %v1100_v42 = vld [vmem:[#allocation2 + $0x5d0] sm:$0xff] }
 0x123   : > { %v913_v9 = vmax.f32 %v897_v63, 0.0  ;;  %v1040_v63 = vld [vmem:[#allocation2 + $0x3f0] sm:$0xff] }
 0x124   : > { %v906_v1 = vmax.f32 %v892_v60, 0.0  ;;  %2540 = vmatpush1.bf16.msra.mxu0 %v2539_v54  ;;  %v2573_v54 = vpack.c.bf16 %v1037_v52, %v1035_v51  ;;  %v2605_v52 = vpack.c.bf16 %v1069_v50, %v1067_v49  ;;  %v1102_v49 = vld [vmem:[#allocation2 + $0x5e0] sm:$0xff]  ;;  %v1104_v50 = vld [vmem:[#allocation2 + $0x5f0] sm:$0xff] }
 0x125   : > { %2542 = vmatprep.subr.bf16.mxu0 %v2541_v56  ;;  %v1036_v56 = vld [vmem:[#allocation2 + $0x3d0] sm:$0xff] }
 0x126   : > { %2333 = vmatmul.mubr.msk.f32.vlgmr.msra.gmra.mrb[14].mxu1 %vm1110_vm2, %v906_v1  ;;  %v2575_v60 = vpack.c.bf16 %v1036_v56, %v1034_v55  ;;  %v1043_v1 = vld [vmem:[#allocation2 + $0x408] sm:$0xff]  ;;  %v1073_v56 = vld [vmem:[#allocation2 + $0x4f8] sm:$0xff] }
 0x127   : > { %1418 = vmatprep.mubr.f32.mxu1 %v2840_v0  ;;  %v1071_v55 = vld [vmem:[#allocation2 + $0x4e8] sm:$0xff] }
 0x128   : > { %2544 = vmatpush1.bf16.msra.mxu0 %v2543_v2  ;;  %v1045_v2 = vld [vmem:[#allocation2 + $0x418] sm:$0xff]  ;;  %v2609_v59 = vpack.c.bf16 %v1073_v56, %v1071_v55  ;;  %v821_v55 = vadd.f32 %v3057_v45, %v3042_v4  ;;  %v1674_v45 = vld [vmem:[%s3453_s6 + $0x10] sm:$0xff] }
 0x129   : > { %2546 = vmatprep.subr.bf16.mxu0 %v2545_v3  ;;  %v2579_v3 = vpack.c.bf16 %v1040_v63, %v1038_v62  ;;  %v2581_v6 = vpack.c.bf16 %v1045_v2, %v1043_v1  ;;  %v1075_v62 = vld [vmem:[#allocation2 + $0x508] sm:$0xff]  ;;  %v1077_v63 = vld [vmem:[#allocation2 + $0x518] sm:$0xff] }
 0x12a   : > { %2334 = vmatmul.mubr.msk.f32.gmra.mrb[16].mxu1 %vm1110_vm2, %v913_v9  ;;  %v746_v9 = vadd.f32 %v3051_v31, %v3042_v4  ;;  %v2613_v2 = vpack.c.bf16 %v1077_v63, %v1075_v62 }
 0x12b   : > { %1519 = vmatprep.mubr.f32.mxu1 %v2840_v0 }
 0x12c   : > { %2548 = vmatpush1.bf16.msra.mxu0 %v2547_v10  ;;  %v1047_v10 = vld [vmem:[#allocation2 + $0x428] sm:$0xff]  ;;  %v910_v18 = vmax.f32 %v746_v9, 0.0 }
 0x12d   : > { %2550 = vmatprep.subr.bf16.mxu0 %v2549_v11  ;;  %v1049_v11 = vld [vmem:[#allocation2 + $0x438] sm:$0xff] }
 0x12e   : > { %v2585_v15 = vpack.c.bf16 %v1049_v11, %v1047_v10  ;;  %v1078_v10 = vld [vmem:[#allocation2 + $0x520] sm:$0xff]  ;;  %v1080_v11 = vld [vmem:[#allocation2 + $0x530] sm:$0xff] }
 0x12f   : > { %v2619_v14 = vpack.c.bf16 %v1080_v11, %v1078_v10  ;;  %v1551_v10 = vld [vmem:[%s3455_s8] sm:$0xff]  ;;  %v1552_v11 = vld [vmem:[%s3455_s8 + $0x8] sm:$0xff] }
 0x130   : > { %2552 = vmatpush1.bf16.msra.mxu0 %v2551_v16  ;;  %v1046_v16 = vld [vmem:[#allocation2 + $0x420] sm:$0xff] }
 0x131   : > { %2554 = vmatprep.subr.bf16.mxu0 %v2553_v17  ;;  %v1048_v17 = vld [vmem:[#allocation2 + $0x430] sm:$0xff] }
 0x132   : > { %v2587_v31 = vpack.c.bf16 %v1048_v17, %v1046_v16  ;;  %v1082_v16 = vld [vmem:[#allocation2 + $0x540] sm:$0xff]  ;;  %v1084_v17 = vld [vmem:[#allocation2 + $0x550] sm:$0xff] }
 0x134   : > { %2556 = vmatpush1.bf16.msra.mxu0 %v2555_v23  ;;  %v2589_v23 = vpack.c.bf16 %v1053_v21, %v1051_v20  ;;  %v2623_v20 = vpack.c.bf16 %v1084_v17, %v1082_v16  ;;  %v1554_v16 = vld [vmem:[%s3455_s8 + $0x18] sm:$0xff]  ;;  %v1426_v17 = vld [vmem:[%s3450_s3 + $0x8] sm:$0xff] }
 0x135   : > { %2558 = vmatprep.subr.bf16.mxu0 %v2557_v24  ;;  %v1050_v24 = vld [vmem:[#allocation2 + $0x440] sm:$0xff] }
 0x136   : > { %v2591_v28 = vpack.c.bf16 %v1052_v25, %v1050_v24  ;;  %v1093_v24 = vld [vmem:[#allocation2 + $0x598] sm:$0xff] }
 0x138   : > { %2560 = vmatpush1.bf16.msra.mxu0 %v2559_v30  ;;  %v1054_v30 = vld [vmem:[#allocation2 + $0x460] sm:$0xff] }
 0x139   : > { %2562 = vmatprep.subr.bf16.mxu0 %v2561_v32  ;;  %v1056_v32 = vld [vmem:[#allocation2 + $0x470] sm:$0xff] }
 0x13a   : > { %v2595_v35 = vpack.c.bf16 %v1056_v32, %v1054_v30  ;;  %v2631_v30 = vpack.c.bf16 %v1092_v27, %v1090_v26  ;;  %v1561_v27 = vld [vmem:[%s3455_s8 + $0x50] sm:$0xff] }
 0x13c   : > { %2564 = vmatpush1.bf16.msra.mxu0 %v2563_v38  ;;  %v1058_v38 = vld [vmem:[#allocation2 + $0x480] sm:$0xff] }
 0x13d   : > { %2566 = vmatprep.subr.bf16.mxu0 %v2565_v40  ;;  %v1060_v40 = vld [vmem:[#allocation2 + $0x490] sm:$0xff] }
 0x13e   : > { %v2599_v43 = vpack.c.bf16 %v1060_v40, %v1058_v38  ;;  %v2635_v38 = vpack.c.bf16 %v1096_v34, %v1094_v33  ;;  %v1565_v34 = vld [vmem:[%s3455_s8 + $0x70] sm:$0xff] }
 0x140   : > { %2568 = vmatpush1.bf16.msra.mxu0 %v2567_v46  ;;  %v1062_v46 = vld [vmem:[#allocation2 + $0x4a0] sm:$0xff] }
 0x141   : > { %2570 = vmatprep.subr.bf16.mxu0 %v2569_v48  ;;  %v1064_v48 = vld [vmem:[#allocation2 + $0x4b0] sm:$0xff] }
 0x142   : > { %v2603_v51 = vpack.c.bf16 %v1064_v48, %v1062_v46  ;;  %v2639_v46 = vpack.c.bf16 %v1100_v42, %v1098_v41  ;;  %v1569_v42 = vld [vmem:[%s3455_s8 + $0x90] sm:$0xff] }
 0x144   : > { %2572 = vmatpush1.bf16.msra.mxu0 %v2571_v53  ;;  %v1066_v53 = vld [vmem:[#allocation2 + $0x4c0] sm:$0xff] }
 0x145   : > { %2574 = vmatprep.subr.bf16.mxu0 %v2573_v54  ;;  %v1068_v54 = vld [vmem:[#allocation2 + $0x4d0] sm:$0xff] }
 0x146   : > { %v2607_v57 = vpack.c.bf16 %v1068_v54, %v1066_v53  ;;  %v823_v53 = vadd.f32 %v3059_v47, %v3042_v4  ;;  %v1672_v4 = vld [vmem:[%s3453_s6] sm:$0xff] }
 0x148   : > { %2576 = vmatpush1.bf16.msra.mxu0 %v2575_v60  ;;  %v1070_v60 = vld [vmem:[#allocation2 + $0x4e0] sm:$0xff]  ;;  %v912_v56 = vmax.f32 %v823_v53, 0.0 }
 0x149   : > { %2578 = vmatprep.subr.bf16.mxu0 %v2577_v61  ;;  %v1072_v61 = vld [vmem:[#allocation2 + $0x4f0] sm:$0xff]  ;;  %v1575_v53 = vld [vmem:[%s3455_s8 + $0xc0] sm:$0xf] }
 0x14a   : > { %v2611_v1 = vpack.c.bf16 %v1072_v61, %v1070_v60 }
 0x14c   : > { %2580 = vmatpush1.bf16.msra.mxu0 %v2579_v3  ;;  %v1074_v3 = vld [vmem:[#allocation2 + $0x500] sm:$0xff] }
 0x14d   : > { %2582 = vmatprep.subr.bf16.mxu0 %v2581_v6  ;;  %v1079_v6 = vld [vmem:[#allocation2 + $0x528] sm:$0xff]  ;;  %v2615_v8 = vpack.c.bf16 %v1076_v5, %v1074_v3 }
 0x14e   : > { %v2617_v9 = vpack.c.bf16 %v1081_v7, %v1079_v6 }
 0x14f   : > { %1259 = vmatmul.mubr.f32.vlgmr.msra.gmra.mrb[0].mxu0 %v902_v13  ;;  %v1085_v13 = vld [vmem:[#allocation2 + $0x558] sm:$0xff] }
 0x150   : > { %1264 = vmatprep.mubr.f32.mxu0 %v910_v18  ;;  %2584 = vmatpush1.bf16.msra.mxu0 %v2583_v12  ;;  %v1083_v12 = vld [vmem:[#allocation2 + $0x548] sm:$0xff] }
 0x151   : > { %2586 = vmatprep.subr.bf16.mxu0 %v2585_v15  ;;  %v2621_v15 = vpack.c.bf16 %v1085_v13, %v1083_v12  ;;  %v1087_v18 = vld [vmem:[#allocation2 + $0x568] sm:$0xff]  ;;  %v1425_v12 = vld [vmem:[%s3450_s3] sm:$0xff]  ;;  %v2654_v13 = vpack.c.bf16 %v1552_v11, %v1551_v10 }
 0x152   : > { %v2625_v21 = vpack.c.bf16 %v1089_v19, %v1087_v18  ;;  %v1555_v19 = vld [vmem:[%s3455_s8 + $0x20] sm:$0xff] }
 0x153   : > { %1265 = vmatmul.mubr.f32.gmra.mrb[2].mxu0 %v909_v22  ;;  %v1088_v22 = vld [vmem:[#allocation2 + $0x570] sm:$0xff] }
 0x154   : > { %2588 = vmatpush1.bf16.msra.mxu0 %v2587_v31  ;;  %1335 = vmatprep.mubr.f32.mxu0 %v905_v29  ;;  %v1086_v31 = vld [vmem:[#allocation2 + $0x560] sm:$0xff] }
 0x155   : > { %2590 = vmatprep.subr.bf16.mxu0 %v2589_v23  ;;  %v1091_v23 = vld [vmem:[#allocation2 + $0x588] sm:$0xff]  ;;  %v2627_v25 = vpack.c.bf16 %v1088_v22, %v1086_v31  ;;  %v1557_v22 = vld [vmem:[%s3455_s8 + $0x30] sm:$0xff] }
 0x156   : > { %v2629_v29 = vpack.c.bf16 %v1093_v24, %v1091_v23  ;;  %v1558_v23 = vld [vmem:[%s3455_s8 + $0x38] sm:$0xff] }
 0x157   : > { %v2663_v24 = vpack.c.bf16 %v1558_v23, %v1557_v22  ;;  %v1669_v22 = vld [vmem:[%s3452_s5 + $0x8] sm:$0xff]  ;;  %v1670_v23 = vld [vmem:[%s3452_s5 + $0x10] sm:$0xff] }
 0x158   : > { %2592 = vmatpush1.bf16.msra.mxu0 %v2591_v28  ;;  %v1095_v28 = vld [vmem:[#allocation2 + $0x5a8] sm:$0xff] }
 0x159   : > { %2594 = vmatprep.subr.bf16.mxu0 %v2593_v39  ;;  %v1097_v39 = vld [vmem:[#allocation2 + $0x5b8] sm:$0xff] }
 0x15a   : > { %v2633_v32 = vpack.c.bf16 %v1097_v39, %v1095_v28  ;;  %v1562_v28 = vld [vmem:[%s3455_s8 + $0x58] sm:$0xff] }
 0x15b   : > { %v2669_v39 = vpack.c.bf16 %v1562_v28, %v1561_v27  ;;  %v1809_v28 = vld [vmem:[%s3456_s9 + $0x30] sm:$0x1] }
 0x15c   : > { %2596 = vmatpush1.bf16.msra.mxu0 %v2595_v35  ;;  %v1099_v35 = vld [vmem:[#allocation2 + $0x5c8] sm:$0xff] }
 0x15d   : > { %2598 = vmatprep.subr.bf16.mxu0 %v2597_v36  ;;  %v1101_v36 = vld [vmem:[#allocation2 + $0x5d8] sm:$0xff] }
 0x15e   : > { %v2637_v40 = vpack.c.bf16 %v1101_v36, %v1099_v35  ;;  %v1566_v35 = vld [vmem:[%s3455_s8 + $0x78] sm:$0xff] }
 0x15f   : > { %v2675_v36 = vpack.c.bf16 %v1566_v35, %v1565_v34  ;;  %v1916_v35 = vld [vmem:[%s3457_s10] sm:$0xff] }
 0x160   : > { %2600 = vmatpush1.bf16.msra.mxu0 %v2599_v43  ;;  %v1103_v43 = vld [vmem:[#allocation2 + $0x5e8] sm:$0xff] }
 0x161   : > { %2602 = vmatprep.subr.bf16.mxu0 %v2601_v44  ;;  %v1105_v44 = vld [vmem:[#allocation2 + $0x5f8] sm:$0xff] }
 0x162   : > { %v2641_v48 = vpack.c.bf16 %v1105_v44, %v1103_v43  ;;  %v1570_v43 = vld [vmem:[%s3455_s8 + $0x98] sm:$0xff] }
 0x163   : > { %v2681_v44 = vpack.c.bf16 %v1570_v43, %v1569_v42 }
 0x164   : > { %2604 = vmatpush1.bf16.msra.mxu0 %v2603_v51  ;;  %v2643_v51 = vpack.c.bf16 %v1104_v50, %v1102_v49  ;;  %v1573_v50 = vld [vmem:[%s3455_s8 + $0xb0] sm:$0xff] }
 0x165   : > { %2606 = vmatprep.subr.bf16.mxu0 %v2605_v52  ;;  %v815_v52 = vadd.f32 %v3053_v37, %v3038_v58  ;;  %v1429_v37 = vld [vmem:[%s3451_s4 + $0x8] sm:$0xff] }
 0x167   : > { %v904_v54 = vmax.f32 %v815_v52, 0.0 }
 0x168   : > { %2608 = vmatpush1.bf16.msra.mxu0 %v2607_v57  ;;  %v911_v57 = vmax.f32 %v821_v55, 0.0 }
 0x169   : > { %2610 = vmatprep.subr.bf16.mxu0 %v2609_v59  ;;  %v1428_v59 = vld [vmem:[%s3451_s4] sm:$0xff] }
 0x16a   : > { %1433 = vperm.xlu1 %2793, %v1428_v59  }
 0x16c   : > { %2612 = vmatpush1.bf16.msra.mxu0 %v2611_v1 }
 0x16d   : > { %2614 = vmatprep.subr.bf16.mxu0 %v2613_v2 }
 0x16e   : > { %1438 = vperm.xlu1 %2793, %v1429_v37  }
 0x170   : > { %2616 = vmatpush1.bf16.msra.mxu0 %v2615_v8 }
 0x171   : > { %2618 = vmatprep.subr.bf16.mxu0 %v2617_v9 }
 0x172   : > { %1678 = vperm.xlu1 %2793, %v1672_v4  }
 0x174   : > { %2620 = vmatpush1.bf16.msra.mxu0 %v2619_v14  ;;  %v2842_v14 = vmov 0.0|0.0  }
 0x175   : > { %2622 = vmatprep.subr.bf16.mxu0 %v2621_v15  ;;  %v1553_v15 = vld [vmem:[%s3455_s8 + $0x10] sm:$0xff] }
 0x176   : > { %1688 = vperm.xlu1 %2793, %v1674_v45   ;;  %v2657_v18 = vpack.c.bf16 %v1554_v16, %v1553_v15  ;;  %v1803_v16 = vld [vmem:[%s3456_s9] sm:$0xff] }
 0x178   : > { %2624 = vmatpush1.bf16.msra.mxu0 %v2623_v20  ;;  %v1556_v20 = vld [vmem:[%s3455_s8 + $0x28] sm:$0xff] }
 0x179   : > { %2626 = vmatprep.subr.bf16.mxu0 %v2625_v21  ;;  %v1427_v21 = vld [vmem:[%s3450_s3 + $0x10] sm:$0xff]  ;;  %v2660_v31 = vpack.c.bf16 %v1556_v20, %v1555_v19  ;;  %v1806_v20 = vld [vmem:[%s3456_s9 + $0x18] sm:$0xff] }
 0x17a   : > { %v1805_v19 = vld [vmem:[%s3456_s9 + $0x10] sm:$0xff] }
 0x17c   : > { %2628 = vmatpush1.bf16.msra.mxu0 %v2627_v25  ;;  %v1559_v25 = vld [vmem:[%s3455_s8 + $0x40] sm:$0xff] }
 0x17d   : > { %2630 = vmatprep.subr.bf16.mxu0 %v2629_v29  ;;  %v1560_v29 = vld [vmem:[%s3455_s8 + $0x48] sm:$0xff] }
 0x17e   : > { %v2666_v26 = vpack.c.bf16 %v1560_v29, %v1559_v25  ;;  %v1671_v25 = vld [vmem:[%s3452_s5 + $0x18] sm:$0xff]  ;;  %v1807_v29 = vld [vmem:[%s3456_s9 + $0x20] sm:$0xff] }
 0x180   : > { %2632 = vmatpush1.bf16.msra.mxu0 %v2631_v30  ;;  %v1563_v30 = vld [vmem:[%s3455_s8 + $0x60] sm:$0xff] }
 0x181   : > { %2634 = vmatprep.subr.bf16.mxu0 %v2633_v32  ;;  %v1564_v32 = vld [vmem:[%s3455_s8 + $0x68] sm:$0xff] }
 0x182   : > { %v2672_v33 = vpack.c.bf16 %v1564_v32, %v1563_v30 }
 0x184   : > { %2636 = vmatpush1.bf16.msra.mxu0 %v2635_v38  ;;  %v1567_v38 = vld [vmem:[%s3455_s8 + $0x80] sm:$0xff] }
 0x185   : > { %2638 = vmatprep.subr.bf16.mxu0 %v2637_v40  ;;  %v1568_v40 = vld [vmem:[%s3455_s8 + $0x88] sm:$0xff] }
 0x186   : > { %v2678_v41 = vpack.c.bf16 %v1568_v40, %v1567_v38 }
 0x188   : > { %2640 = vmatpush1.bf16.msra.mxu0 %v2639_v46  ;;  %v1571_v46 = vld [vmem:[%s3455_s8 + $0xa0] sm:$0xff] }
 0x189   : > { %2642 = vmatprep.subr.bf16.mxu0 %v2641_v48  ;;  %v1572_v48 = vld [vmem:[%s3455_s8 + $0xa8] sm:$0xff] }
 0x18a   : > { %v2684_v49 = vpack.c.bf16 %v1572_v48, %v1571_v46 }
 0x18c   : > { %2644 = vmatpush1.bf16.msra.mxu0 %v2643_v51  ;;  %v1574_v51 = vld [vmem:[%s3455_s8 + $0xb8] sm:$0xff] }
 0x18d   : > { %v2687_v52 = vpack.c.bf16 %v1574_v51, %v1573_v50  ;;  %v1918_v50 = vld [vmem:[%s3457_s10 + $0x10] sm:$0xff]  ;;  %v1919_v51 = vld [vmem:[%s3457_s10 + $0x18] sm:$0xff] }
 0x18f   : > { %1336 = vmatmul.mubr.f32.vlgmr.msra.gmra.mrb[0].mxu0 %v904_v54 }
 0x190   : > { %1341 = vmatprep.mubr.f32.mxu0 %v912_v56 }
 0x193   : > { %1342 = vmatmul.mubr.f32.gmra.mrb[2].mxu0 %v911_v57 }
 0x1e9   : > { %v1434_v54 = vpop.permute.xlu1 %1433 }
 0x1f9   : > { %v1414_v60 = vpop.f32.mrb[14].mxu1 }
 0x1fa   : > { %v1416_v58 = vpop.f32.mrb[15].mxu1 }
 0x1fd   : > { %v1420_v47 = vpop.f32.mrb[16].mxu1 }
 0x1fe   : > { %v1422_v61 = vpop.f32.mrb[17].mxu1 }
 0x262   : > { %v1337_v62 = vpop.f32.mrb[0].mxu0 }
 0x263   : > { %v2753_v63 = vadd.f32 %v1414_v60, %v1337_v62  ;;  %v1339_v1 = vpop.f32.mrb[1].mxu0 }
 0x264   : > { %v2754_v2 = vadd.f32 %v1416_v58, %v1339_v1  ;;  %v1439_v58 = vpop.permute.xlu1 %1438 }
 0x266   : > { %v1343_v3 = vpop.f32.mrb[2].mxu0 }
 0x267   : > { %v2755_v5 = vadd.f32 %v1420_v47, %v1343_v3  ;;  %v1345_v6 = vpop.f32.mrb[3].mxu0 }
 0x268   : > { %v2756_v7 = vadd.f32 %v1422_v61, %v1345_v6  ;;  %v1679_v30 = vpop.permute.xlu1 %1678 }
 0x269   : > { %v2651_v8 = vpack.c.bf16 %v2755_v5, %v2753_v63  ;;  %v1444_v63 = vpop.permute.xlu0 %1443 }
 0x26a   : > { %v2649_v9 = vpack.c.bf16 %v2756_v7, %v2754_v2 }
 0x26c   : > { %2650 = vmatprep.subr.bf16.mxu1 %v2649_v9  ;;  %v1668_v9 = vld [vmem:[%s3452_s5] sm:$0xff] }
 0x26d   : > { %2652 = vmatpush1.bf16.msra.mxu1 %v2651_v8 }
 0x26e   : > { %2653 = vmatprep.subr.bf16.mxu1 %v2842_v14 }
 0x270   : > { %2335 = vmatmul.mubr.msk.f32.vlgmr.msra.gmra.mrb[18].mxu1 %vm1110_vm2, %v1425_v12 }
 0x271   : > { %1525 = vmatprep.mubr.f32.mxu1 %v2840_v0  ;;  %2655 = vmatpush1.bf16.msra.mxu1 %v2654_v13 }
 0x272   : > { %2656 = vmatprep.subr.bf16.mxu1 %v2842_v14 }
 0x274   : > { %2336 = vmatmul.mubr.msk.f32.gmra.mrb[20].mxu1 %vm1110_vm2, %v1426_v17  ;;  %v1804_v17 = vld [vmem:[%s3456_s9 + $0x8] sm:$0xff] }
 0x275   : > { %1531 = vmatprep.mubr.f32.mxu1 %v2840_v0  ;;  %2658 = vmatpush1.bf16.msra.mxu1 %v2657_v18 }
 0x276   : > { %2659 = vmatprep.subr.bf16.mxu1 %v2842_v14 }
 0x278   : > { %2337 = vmatmul.mubr.msk.f32.gmra.mrb[22].mxu1 %vm1110_vm2, %v1427_v21 }
 0x279   : > { %2661 = vmatpush1.bf16.msra.mxu1 %v2660_v31  ;;  %v2693_v31 = vpack.c.bf16 %v1804_v17, %v1803_v16  ;;  %v1934_v17 = vld [vmem:[%s3457_s10 + $0x90] sm:$0xff] }
 0x27a   : > { %2662 = vmatprep.subr.bf16.mxu1 %v2842_v14 }
 0x27d   : > { %2664 = vmatpush1.bf16.msra.mxu1 %v2663_v24  ;;  %v2697_v24 = vpack.c.bf16 %v1806_v20, %v1805_v19  ;;  %v1936_v20 = vld [vmem:[%s3457_s10 + $0xa0] sm:$0xff] }
 0x27e   : > { %2665 = vmatprep.subr.bf16.mxu1 %v2842_v14 }
 0x281   : > { %2667 = vmatpush1.bf16.msra.mxu1 %v2666_v26  ;;  %v1808_v26 = vld [vmem:[%s3456_s9 + $0x28] sm:$0xff] }
 0x282   : > { %2668 = vmatprep.subr.bf16.mxu1 %v2842_v14  ;;  %v2701_v27 = vpack.c.bf16 %v1808_v26, %v1807_v29  ;;  %v2028_v29 = vld [vmem:[%s3458_s11 + $0x8] sm:$0xff]  ;;  %v2029_v26 = vld [vmem:[%s3458_s11 + $0x10] sm:$0xff] }
 0x285   : > { %2670 = vmatpush1.bf16.msra.mxu1 %v2669_v39  ;;  %v1684_v39 = vpop.permute.xlu0 %1683 }
 0x286   : > { %2671 = vmatprep.subr.bf16.mxu1 %v2842_v14 }
 0x289   : > { %2673 = vmatpush1.bf16.msra.mxu1 %v2672_v33  ;;  %v1694_v40 = vpop.permute.xlu0 %1693 }
 0x28a   : > { %2674 = vmatprep.subr.bf16.mxu1 %v2842_v14 }
 0x28d   : > { %2676 = vmatpush1.bf16.msra.mxu1 %v2675_v36  ;;  %v1917_v36 = vld [vmem:[%s3457_s10 + $0x8] sm:$0xff] }
 0x28e   : > { %2677 = vmatprep.subr.bf16.mxu1 %v2842_v14  ;;  %v2706_v43 = vpack.c.bf16 %v1917_v36, %v1916_v35 }
 0x291   : > { %2679 = vmatpush1.bf16.msra.mxu1 %v2678_v41 }
 0x292   : > { %2680 = vmatprep.subr.bf16.mxu1 %v2842_v14 }
 0x295   : > { %2682 = vmatpush1.bf16.msra.mxu1 %v2681_v44  ;;  %v1689_v44 = vpop.permute.xlu1 %1688 }
 0x296   : > { %2683 = vmatprep.subr.bf16.mxu1 %v2842_v14 }
 0x299   : > { %2685 = vmatpush1.bf16.msra.mxu1 %v2684_v49 }
 0x29a   : > { %2686 = vmatprep.subr.bf16.mxu1 %v2842_v14 }
 0x29d   : > { %2688 = vmatpush1.bf16.msra.mxu1 %v2687_v52 }
 0x29e   : > { %1636 = vmatprep.subr.mxu1 %v2840_v0 }
 0x2a1   : > { %2338 = vmatpush1.msk.msra.mxu1 %vm579_vm0, %v1575_v53 }
 0x343   : > { %v1521_v55 = vpop.f32.mrb[18].mxu1 }
 0x344   : > { %v1522_v56 = vadd.f32 %v1521_v55, %v1434_v54  ;;  %v1523_v57 = vpop.f32.mrb[19].mxu1 }
 0x345   : > { %v1524_v59 = vadd.f32 %v1523_v57, %v1434_v54  ;;  %v2709_v54 = vpack.c.bf16 %v1919_v51, %v1918_v50  ;;  %v1921_v57 = vld [vmem:[%s3457_s10 + $0x28] sm:$0xff] }
 0x346   : > { %v3200_v60 = vmax.f32 %v1522_v56, 0.0  ;;  %v1920_v56 = vld [vmem:[%s3457_s10 + $0x20] sm:$0xff] }
 0x347   : > { %v3202_v37 = vmax.f32 %v1524_v59, 0.0  ;;  %v1527_v47 = vpop.f32.mrb[20].mxu1  ;;  %v2712_v59 = vpack.c.bf16 %v1921_v57, %v1920_v56 }
 0x348   : > { %1544 = vst [vmem:[%s536_s30] sm:$0xff] %v3200_v60  ;;  %v1528_v61 = vadd.f32 %v1527_v47, %v1439_v58  ;;  %v1529_v4 = vpop.f32.mrb[21].mxu1  ;;  %v1923_v47 = vld [vmem:[%s3457_s10 + $0x38] sm:$0xff] }
 0x349   : > { %1546 = vst.msk [vmem:[%s536_s30 + $0x8] sm:$0xff] %vm1545_vm3, %v3202_v37  ;;  %v1530_v45 = vadd.f32 %v1529_v4, %v1439_v58  ;;  %2339 = vmatprep.mubr.msk.f32.mxu1 %vm1545_vm3, %v3202_v37  ;;  %v1922_v58 = vld [vmem:[%s3457_s10 + $0x30] sm:$0xff]  ;;  %v1924_v4 = vld [vmem:[%s3457_s10 + $0x40] sm:$0xff] }
 0x34a   : > { %v3209_v62 = vmax.f32 %v1528_v61, 0.0  ;;  %1653 = vmatmul.mubr.f32.vlgmr.msra.gmra.mrb[24].mxu1 %v3200_v60  ;;  %v2715_v61 = vpack.c.bf16 %v1923_v47, %v1922_v58 }
 0x34b   : > { %v3212_v1 = vmax.f32 %v1530_v45, 0.0  ;;  %v1533_v2 = vpop.f32.mrb[22].mxu1 }
 0x34c   : > { %1547 = vst [vmem:[%s536_s30 + $0x10] sm:$0xff] %v3209_v62  ;;  %v1534_v3 = vadd.f32 %v1533_v2, %v1444_v63  ;;  %v1535_v5 = vpop.f32.mrb[23].mxu1  ;;  %v1927_v2 = vld [vmem:[%s3457_s10 + $0x58] sm:$0xff] }
 0x34d   : > { %1548 = vst.msk [vmem:[%s536_s30 + $0x18] sm:$0xff] %vm1545_vm3, %v3212_v1  ;;  %v1536_v6 = vadd.f32 %v1535_v5, %v1444_v63  ;;  %2340 = vmatprep.mubr.msk.f32.mxu1 %vm1545_vm3, %v3212_v1  ;;  %v1926_v63 = vld [vmem:[%s3457_s10 + $0x50] sm:$0xff]  ;;  %v1928_v5 = vld [vmem:[%s3457_s10 + $0x60] sm:$0xff] }
 0x34e   : > { %v3219_v7 = vmax.f32 %v1534_v3, 0.0  ;;  %1658 = vmatmul.mubr.f32.gmra.mrb[26].mxu1 %v3209_v62  ;;  %v2721_v3 = vpack.c.bf16 %v1927_v2, %v1926_v63 }
 0x34f   : > { %v3222_v8 = vmax.f32 %v1536_v6, 0.0  ;;  %v1929_v6 = vld [vmem:[%s3457_s10 + $0x68] sm:$0xff] }
 0x350   : > { %1549 = vst [vmem:[%s536_s30 + $0x20] sm:$0xff] %v3219_v7 }
 0x351   : > { %1550 = vst.msk [vmem:[%s536_s30 + $0x28] sm:$0xff] %vm1545_vm3, %v3222_v8  ;;  %2341 = vmatprep.mubr.msk.f32.mxu1 %vm1545_vm3, %v3222_v8  ;;  %s541_s30 = scalar_lea.vmem %s3461_s14, %s2362_s27 }
 0x352   : > { %1663 = vmatmul.mubr.f32.gmra.mrb[28].mxu1 %v3219_v7 }
 0x353   : > { %2407 = vmatprep.mubr.msk.f32.mxu1 %vm1696_vm4, %v1668_v9  ;;  %v2724_v9 = vpack.c.bf16 %v1929_v6, %v1928_v5 }
 0x41d   : > { %v1654_v10 = vpop.f32.mrb[24].mxu1 }
 0x41e   : > { %v1656_v11 = vpop.f32.mrb[25].mxu1 }
 0x41f   : > { %v1931_v11 = vld [vmem:[%s3457_s10 + $0x78] sm:$0xff] }
 0x421   : > { %v1659_v12 = vpop.f32.mrb[26].mxu1 }
 0x422   : > { %v2689_v13 = vpack.c.bf16 %v1659_v12, %v1654_v10  ;;  %v1661_v15 = vpop.f32.mrb[27].mxu1  ;;  %v1930_v10 = vld [vmem:[%s3457_s10 + $0x70] sm:$0xff] }
 0x423   : > { %v2727_v12 = vpack.c.bf16 %v1931_v11, %v1930_v10  ;;  %v1933_v15 = vld [vmem:[%s3457_s10 + $0x88] sm:$0xff] }
 0x424   : > { %2690 = vmatprep.subr.bf16.mxu1 %v2689_v13 }
 0x425   : > { %v1664_v18 = vpop.f32.mrb[28].mxu1  ;;  %2692 = vmatpush3.bf16.msra.mxu1 %v2689_v13  ;;  %v1932_v13 = vld [vmem:[%s3457_s10 + $0x80] sm:$0xff] }
 0x426   : > { %v1666_v21 = vpop.f32.mrb[29].mxu1  ;;  %2405 = vmatprep.subr.mxu1 %v1664_v18  ;;  %v2730_v16 = vpack.c.bf16 %v1933_v15, %v1932_v13 }
 0x427   : > { %v1937_v21 = vld [vmem:[%s3457_s10 + $0xa8] sm:$0xff] }
 0x429   : > { %2406 = vmatpush3.msra.mxu1 %v1664_v18  ;;  %v1935_v18 = vld [vmem:[%s3457_s10 + $0x98] sm:$0xff] }
 0x42a   : > { %2408 = vmatmul.mubr.msk.f32.vlgmr.msra.gmra.mrb[30].mxu1 %vm1696_vm4, %v1669_v22  ;;  %2694 = vmatprep.subr.bf16.mxu1 %v2693_v31  ;;  %v2733_v19 = vpack.c.bf16 %v1935_v18, %v1934_v17  ;;  %v1938_v22 = vld [vmem:[%s3457_s10 + $0xb0] sm:$0xff] }
 0x42b   : > { %2410 = vmatprep.mubr.msk.f32.mxu1 %vm1696_vm4, %v1670_v23  ;;  %2696 = vmatpush3.bf16.msra.mxu1 %v2693_v31  ;;  %v2736_v31 = vpack.c.bf16 %v1937_v21, %v1936_v20  ;;  %v1939_v23 = vld [vmem:[%s3457_s10 + $0xb8] sm:$0xff] }
 0x42c   : > { %2698 = vmatprep.subr.bf16.mxu1 %v2697_v24 }
 0x42e   : > { %2411 = vmatmul.mubr.msk.f32.gmra.mrb[32].mxu1 %vm1696_vm4, %v1671_v25  ;;  %v2027_v25 = vld [vmem:[%s3458_s11] sm:$0xff] }
 0x42f   : > { %2700 = vmatpush3.bf16.msra.mxu1 %v2697_v24  ;;  %v2739_v24 = vpack.c.bf16 %v1939_v23, %v1938_v22 }
 0x430   : > { %2702 = vmatprep.subr.bf16.mxu1 %v2701_v27 }
 0x433   : > { %2704 = vmatpush3.bf16.msra.mxu1 %v2701_v27  ;;  %v2030_v27 = vld [vmem:[%s3458_s11 + $0x18] sm:$0xff] }
 0x434   : > { %2425 = vmatprep.subr.msk.mxu1 %vm1822_vm5, %v1809_v28 }
 0x437   : > { %2426 = vmatpush3.msk.msra.mxu1 %vm1822_vm5, %v1809_v28  ;;  %v2741_v28 = vpack.c.bf16 %v2028_v29, %v2027_v25 }
 0x438   : > { %2705 = vmatprep.subr.bf16.mxu1 %v2842_v14 }
 0x4fd   : > { %v2409_v32 = vpop.f32.mrb[30].mxu1 }
 0x4fe   : > { %v3276_v33 = vadd.f32 %v2409_v32, %v1684_v39  ;;  %v1775_v34 = vpop.f32.mrb[31].mxu1  ;;  %v2745_v39 = vpack.c.bf16 %v2030_v27, %v2029_v26  ;;  %v2032_v32 = vld [vmem:[%s3458_s11 + $0x28] sm:$0xff] }
 0x4ff   : > { %v3284_v38 = vadd.f32 %v1775_v34, %v1679_v30  ;;  %v2031_v30 = vld [vmem:[%s3458_s11 + $0x20] sm:$0xff]  ;;  %v2033_v34 = vld [vmem:[%s3458_s11 + $0x30] sm:$0x1] }
 0x500   : > { %1796 = vst.msk [vmem:[%s541_s30 + $0x8] sm:$0xff] %vm1794_vm6, %v3276_v33  ;;  %v1800_v46 = vmax.f32 %v3276_v33, 0.0 }
 0x501   : > { %1795 = vst.msk [vmem:[%s541_s30] sm:$0xff] %vm1794_vm6, %v3284_v38  ;;  %v1799_v41 = vmax.f32 %v3284_v38, 0.0  ;;  %v2412_v42 = vpop.f32.mrb[32].mxu1 }
 0x502   : > { %v3292_v48 = vadd.f32 %v2412_v42, %v1694_v40  ;;  %v1785_v49 = vpop.f32.mrb[33].mxu1 }
 0x503   : > { %v3300_v52 = vadd.f32 %v1785_v49, %v1689_v44  ;;  %2427 = vmatprep.mubr.msk.f32.mxu1 %vm1794_vm6, %v1799_v41 }
 0x504   : > { %1798 = vst.msk [vmem:[%s541_s30 + $0x18] sm:$0xff] %vm1794_vm6, %v3292_v48  ;;  %2428 = vmatmul.mubr.msk.f32.vlgmr.msra.gmra.mrb[34].mxu1 %vm1794_vm6, %v1800_v46  ;;  %v1802_v55 = vmax.f32 %v3292_v48, 0.0 }
 0x505   : > { %1797 = vst.msk [vmem:[%s541_s30 + $0x10] sm:$0xff] %vm1794_vm6, %v3300_v52  ;;  %v1801_v53 = vmax.f32 %v3300_v52, 0.0  ;;  %2707 = vmatpush1.bf16.msra.mxu1 %v2706_v43 }
 0x506   : > { %2708 = vmatprep.subr.bf16.mxu1 %v2842_v14 }
 0x507   : > { %2430 = vmatprep.mubr.msk.f32.mxu1 %vm1794_vm6, %v1801_v53 }
 0x508   : > { %2431 = vmatmul.mubr.msk.f32.gmra.mrb[36].mxu1 %vm1794_vm6, %v1802_v55 }
 0x509   : > { %2710 = vmatpush1.bf16.msra.mxu1 %v2709_v54  ;;  %2352 = vmatprep.mubr.msk.f32.mxu1 %vm1545_vm3, %v3202_v37  ;;  %v1925_v37 = vld [vmem:[%s3457_s10 + $0x48] sm:$0xff] }
 0x50a   : > { %2711 = vmatprep.subr.bf16.mxu1 %v2842_v14  ;;  %v2718_v45 = vpack.c.bf16 %v1925_v37, %v1924_v4 }
 0x50d   : > { %2713 = vmatpush1.bf16.msra.mxu1 %v2712_v59 }
 0x50e   : > { %2714 = vmatprep.subr.bf16.mxu1 %v2842_v14 }
 0x511   : > { %2716 = vmatpush1.bf16.msra.mxu1 %v2715_v61 }
 0x512   : > { %2717 = vmatprep.subr.bf16.mxu1 %v2842_v14 }
 0x515   : > { %2719 = vmatpush1.bf16.msra.mxu1 %v2718_v45 }
 0x516   : > { %2720 = vmatprep.subr.bf16.mxu1 %v2842_v14 }
 0x519   : > { %2722 = vmatpush1.bf16.msra.mxu1 %v2721_v3 }
 0x51a   : > { %2723 = vmatprep.subr.bf16.mxu1 %v2842_v14 }
 0x51d   : > { %2725 = vmatpush1.bf16.msra.mxu1 %v2724_v9 }
 0x51e   : > { %2726 = vmatprep.subr.bf16.mxu1 %v2842_v14 }
 0x521   : > { %2728 = vmatpush1.bf16.msra.mxu1 %v2727_v12 }
 0x522   : > { %2729 = vmatprep.subr.bf16.mxu1 %v2842_v14 }
 0x525   : > { %2731 = vmatpush1.bf16.msra.mxu1 %v2730_v16 }
 0x526   : > { %2732 = vmatprep.subr.bf16.mxu1 %v2842_v14 }
 0x529   : > { %2734 = vmatpush1.bf16.msra.mxu1 %v2733_v19 }
 0x52a   : > { %2735 = vmatprep.subr.bf16.mxu1 %v2842_v14 }
 0x52d   : > { %2737 = vmatpush1.bf16.msra.mxu1 %v2736_v31 }
 0x52e   : > { %2738 = vmatprep.subr.bf16.mxu1 %v2842_v14  ;;  %v1940_v14 = vld [vmem:[%s3457_s10 + $0xc0] sm:$0xf] }
 0x531   : > { %2740 = vmatpush1.bf16.msra.mxu1 %v2739_v24 }
 0x532   : > { %1992 = vmatprep.subr.mxu1 %v2840_v0  ;;  %v2749_v0 = vpack.c.bf16 %v2032_v32, %v2031_v30 }
 0x535   : > { %2351 = vmatpush1.msk.msra.mxu1 %vm579_vm0, %v1940_v14 }
 0x536   : > { %2009 = vmatmul.mubr.f32.vlgmr.msra.gmra.mrb[38].mxu1 %v3200_v60  ;;  %2742 = vmatprep.subr.bf16.mxu1 %v2741_v28 }
 0x537   : > { %2353 = vmatprep.mubr.msk.f32.mxu1 %vm1545_vm3, %v3212_v1  ;;  %2744 = vmatpush3.bf16.msra.mxu1 %v2741_v28 }
 0x538   : > { %2746 = vmatprep.subr.bf16.mxu1 %v2745_v39 }
 0x53a   : > { %2014 = vmatmul.mubr.f32.gmra.mrb[40].mxu1 %v3209_v62 }
 0x53b   : > { %2354 = vmatprep.mubr.msk.f32.mxu1 %vm1545_vm3, %v3222_v8  ;;  %2748 = vmatpush3.bf16.msra.mxu1 %v2745_v39 }
 0x53c   : > { %2750 = vmatprep.subr.bf16.mxu1 %v2749_v0 }
 0x53e   : > { %2019 = vmatmul.mubr.f32.gmra.mrb[42].mxu1 %v3219_v7 }
 0x53f   : > { %2752 = vmatpush3.bf16.msra.mxu1 %v2749_v0  ;;  %2447 = vmatprep.mubr.msk.f32.mxu1 %vm1794_vm6, %v3284_v38 }
 0x540   : > { %2445 = vmatprep.subr.msk.mxu1 %vm1822_vm5, %v2033_v34 }
 0x543   : > { %2446 = vmatpush3.msk.msra.mxu1 %vm1822_vm5, %v2033_v34 }
 0x544   : > { %2448 = vmatmul.mubr.msk.f32.vlgmr.msra.gmra.mrb[44].mxu1 %vm1794_vm6, %v3276_v33 }
 0x545   : > { %2450 = vmatprep.mubr.msk.f32.mxu1 %vm1794_vm6, %v3300_v52 }
 0x548   : > { %2451 = vmatmul.mubr.msk.f32.gmra.mrb[46].mxu1 %vm1794_vm6, %v3292_v48 }
 0x5d7   : > { %v2429_v60 = vpop.f32.mrb[34].mxu1 }
 0x5d8   : > { %1913 = vst.msk [vmem:[%s546_s22 + $0x8] sm:$0xff] %vm1911_vm7, %v2429_v60  ;;  %v1892_v62 = vpop.f32.mrb[35].mxu1 }
 0x5d9   : > { %1912 = vst.msk [vmem:[%s546_s22] sm:$0xff] %vm1911_vm7, %v1892_v62 }
 0x5db   : > { %v2432_v1 = vpop.f32.mrb[36].mxu1 }
 0x5dc   : > { %1915 = vst.msk [vmem:[%s546_s22 + $0x18] sm:$0xff] %vm1911_vm7, %v2432_v1  ;;  %v1902_v7 = vpop.f32.mrb[37].mxu1 }
 0x5dd   : > { %1914 = vst.msk [vmem:[%s546_s22 + $0x10] sm:$0xff] %vm1911_vm7, %v1902_v7 }
 0x609   : > { %v2010_v8 = vpop.f32.mrb[38].mxu1 }
 0x60a   : > { %2024 = vst.msk [vmem:[%s531_s29] sm:$0xff] %vm1794_vm6, %v2010_v8  ;;  %v2012_v33 = vpop.f32.mrb[39].mxu1 }
 0x60d   : > { %v2015_v35 = vpop.f32.mrb[40].mxu1 }
 0x60e   : > { %2025 = vst.msk [vmem:[%s531_s29 + $0x8] sm:$0xff] %vm1794_vm6, %v2015_v35  ;;  %v2017_v36 = vpop.f32.mrb[41].mxu1 }
 0x611   : > { %v2020_v38 = vpop.f32.mrb[42].mxu1 }
 0x612   : > { %2026 = vst.msk [vmem:[%s531_s29 + $0x10] sm:$0xff] %vm1794_vm6, %v2020_v38  ;;  %v2022_v40 = vpop.f32.mrb[43].mxu1 }
 0x617   : > { %v2449_v41 = vpop.f32.mrb[44].mxu1 }
 0x618   : > { %2135 = vst.msk [vmem:[%s531_s29 + $0x20] sm:$0xff] %vm1794_vm6, %v2449_v41  ;;  %v2115_v42 = vpop.f32.mrb[45].mxu1 }
 0x619   : > { %2134 = vst.msk [vmem:[%s531_s29 + $0x18] sm:$0xff] %vm1794_vm6, %v2115_v42 }
 0x61b   : > { %v2452_v43 = vpop.f32.mrb[46].mxu1 }
 0x61c   : > { %2137 = vst.msk [vmem:[%s531_s29 + $0x30] sm:$0xff] %vm1794_vm6, %v2452_v43  ;;  %v2125_v44 = vpop.f32.mrb[47].mxu1 }
 0x61d   : > { %2136 = vst.msk [vmem:[%s531_s29 + $0x28] sm:$0xff] %vm1794_vm6, %v2125_v44 }
 0x61e PF: > { %s27_s18 = sadd.s32 1, %s2835_s18  }
 0x61f   : > { %p24_p3 = scmp.ge.s32.totalorder %s27_s18, 4  }
 0x621   :  { %26 = sbr.rel (!%p24_p3) target bundleno = 1 (0x1), region = 139 }
 0x628   :  { %2207 = vsyncpa [#allocation3], 1 }
 0x629   :  { %2209 = vsyncpa [#allocation3 + $0x1], 1 }

</bundles_post_ra>
